<compile_context>
chip_gen: v7x
topology: tpu7x:2x2x1
jax: 0.10.0
libtpu: 0.0.40
codegen_flags: <defaults>
</compile_context>

<pallas_src>
import functools

import jax
import jax.numpy as jnp
from jax.experimental import pallas as pl
from jax.experimental.pallas import tpu as pltpu

_BN_EPS = 1e-5


def _bn_relu(y, gamma, beta):
    # y: (M, C) = all batch*spatial rows of this stage, so the per-channel
    # mean/var below ARE the BatchNorm batch statistics (biased variance).
    mu = jnp.mean(y, axis=0, keepdims=True)
    var = jnp.maximum(jnp.mean(y * y, axis=0, keepdims=True) - mu * mu, 0.0)
    scale = gamma * jax.lax.rsqrt(var + _BN_EPS)
    shift = beta - mu * scale
    return jnp.maximum(y * scale + shift, 0.0)


def _im2col_3x3(pad_ref, n, h, w, c):
    # pad_ref: (n, h+2, w+2, c) zero-padded activation in VMEM (static slices only).
    # Folds the 9 taps into K so each conv is ONE MXU matmul instead of 9 tiny ones.
    taps = [pad_ref[:, kh:kh + h, kw:kw + w, :]
            for kh in range(3) for kw in range(3)]
    return jnp.concatenate(taps, axis=-1).reshape(n * h * w, 9 * c)


def down_kernel(x_ref, w1_ref, w2_ref, g1_ref, b1_ref, g2_ref, b2_ref,
                o_ref, pad1_ref, pad2_ref, *, n, hh, wh, cin, cout):
    # x_ref:  (n*hh, 2, wh, 2*cin) -- free reshape of the NHWC input so the 2x2
    #         pool pairs sit on a major axis (H) and on lane halves (W): the
    #         pool needs no strided loads at all.
    # w1_ref: (9*cin, cout)   w2_ref: (9*cout, cout)   g*/b*: (1, cout)
    # o_ref:  (n*hh*wh, cout)
    # pad1_ref / pad2_ref: zero-padded VMEM scratch for the two 3x3 convs.

    # ---- MaxPool2d(2) ----
    x = x_ref[...]
    ph = jnp.maximum(x[:, 0], x[:, 1])                 # pool over H pairs
    p = jnp.maximum(ph[..., :cin], ph[..., cin:])      # pool over W pairs
    # p: (n*hh, wh, cin)

    # ---- Conv1 (3x3, pad=1, bias=False) + BN + ReLU ----
    pad1_ref[...] = jnp.zeros(pad1_ref.shape, pad1_ref.dtype)
    pad1_ref[:, 1:hh + 1, 1:wh + 1, :] = p.reshape(n, hh, wh, cin)
    patch1 = _im2col_3x3(pad1_ref, n, hh, wh, cin)     # (M, 9*cin)
    y1 = jnp.dot(patch1, w1_ref[...], preferred_element_type=jnp.float32)
    a1 = _bn_relu(y1, g1_ref[...], b1_ref[...])        # (M, cout)

    # ---- Conv2 (3x3, pad=1, bias=False) + BN + ReLU ----
    pad2_ref[...] = jnp.zeros(pad2_ref.shape, pad2_ref.dtype)
    pad2_ref[:, 1:hh + 1, 1:wh + 1, :] = a1.reshape(n, hh, wh, cout)
    patch2 = _im2col_3x3(pad2_ref, n, hh, wh, cout)    # (M, 9*cout)
    y2 = jnp.dot(patch2, w2_ref[...], preferred_element_type=jnp.float32)
    a2 = _bn_relu(y2, g2_ref[...], b2_ref[...])        # (M, cout)

    o_ref[...] = a2.astype(o_ref.dtype)


@jax.jit
def down_forward(x_nchw, w1_oihw, w2_oihw, gamma1, beta1, gamma2, beta2):
    n, cin, h, w = x_nchw.shape
    cout = w1_oihw.shape[0]
    hh, wh = h // 2, w // 2
    m = n * hh * wh

    # NCHW -> NHWC (channels on the lane axis), crop odd trailing row/col
    # (MaxPool2d floor behavior), then a FREE contiguous reshape that exposes
    # the 2x2 pool window as (major axis, lane halves).
    x_nhwc = jnp.transpose(x_nchw, (0, 2, 3, 1)).astype(jnp.float32)
    x_nhwc = x_nhwc[:, :2 * hh, :2 * wh, :]
    x_view = x_nhwc.reshape(n * hh, 2, wh, 2 * cin)

    # PyTorch OIHW conv weights -> HWIO -> im2col matrix; row order (kh, kw, ci)
    # matches the in-kernel patch concatenation order.
    w1_mat = jnp.transpose(w1_oihw, (2, 3, 1, 0)).reshape(9 * cin, cout).astype(jnp.float32)
    w2_mat = jnp.transpose(w2_oihw, (2, 3, 1, 0)).reshape(9 * cout, cout).astype(jnp.float32)

    g1 = gamma1.reshape(1, cout).astype(jnp.float32)
    b1 = beta1.reshape(1, cout).astype(jnp.float32)
    g2 = gamma2.reshape(1, cout).astype(jnp.float32)
    b2 = beta2.reshape(1, cout).astype(jnp.float32)

    kernel = functools.partial(down_kernel, n=n, hh=hh, wh=wh, cin=cin, cout=cout)

    out2d = pl.pallas_call(
        kernel,
        out_shape=jax.ShapeDtypeStruct((m, cout), jnp.float32),
        grid=(1,),
        in_specs=[
            pl.BlockSpec((n * hh, 2, wh, 2 * cin), lambda i: (0, 0, 0, 0)),
            pl.BlockSpec((9 * cin, cout), lambda i: (0, 0)),
            pl.BlockSpec((9 * cout, cout), lambda i: (0, 0)),
            pl.BlockSpec((1, cout), lambda i: (0, 0)),
            pl.BlockSpec((1, cout), lambda i: (0, 0)),
            pl.BlockSpec((1, cout), lambda i: (0, 0)),
            pl.BlockSpec((1, cout), lambda i: (0, 0)),
        ],
        out_specs=pl.BlockSpec((m, cout), lambda i: (0, 0)),
        scratch_shapes=[
            pltpu.VMEM((n, hh + 2, wh + 2, cin), jnp.float32),
            pltpu.VMEM((n, hh + 2, wh + 2, cout), jnp.float32),
        ],
        compiler_params=pltpu.CompilerParams(
            dimension_semantics=("arbitrary",),
            vmem_limit_bytes=32 * 1024 * 1024,
        ),
    )(x_view, w1_mat, w2_mat, g1, b1, g2, b2)

    # (M, Cout) -> NHWC -> NCHW at the module boundary.
    return jnp.transpose(out2d.reshape(n, hh, wh, cout), (0, 3, 1, 2))


if __name__ == "__main__":
    N, Cin, H, W, Cout = 2, 4, 16, 16, 8

    key = jax.random.PRNGKey(0)
    kx, kw1, kw2 = jax.random.split(key, 3)

    x = jax.random.normal(kx, (N, Cin, H, W), jnp.float32)
    # Conv weights in PyTorch OIHW layout (out, in, kh, kw); converted in-wrapper.
    w1 = jax.random.normal(kw1, (Cout, Cin, 3, 3), jnp.float32) * 0.1
    w2 = jax.random.normal(kw2, (Cout, Cout, 3, 3), jnp.float32) * 0.1
    # BatchNorm affine params at PyTorch defaults.
    gamma1 = jnp.ones((Cout,), jnp.float32)
    beta1 = jnp.zeros((Cout,), jnp.float32)
    gamma2 = jnp.ones((Cout,), jnp.float32)
    beta2 = jnp.zeros((Cout,), jnp.float32)

    out = down_forward(x, w1, w2, gamma1, beta1, gamma2, beta2)
    jax.block_until_ready(out)
    assert out.shape == (N, Cout, H // 2, W // 2)
    print("KERNEL_OK")
</pallas_src>

<mosaic_0001>
module attributes {stable_mosaic.version = 11 : i64} {
  func.func @down_kernel(%arg0: i32, %arg1: memref<16x2x8x8xf32, #tpu.memory_space<vmem>>, %arg2: memref<36x8xf32, #tpu.memory_space<vmem>>, %arg3: memref<72x8xf32, #tpu.memory_space<vmem>>, %arg4: memref<1x8xf32, #tpu.memory_space<vmem>>, %arg5: memref<1x8xf32, #tpu.memory_space<vmem>>, %arg6: memref<1x8xf32, #tpu.memory_space<vmem>>, %arg7: memref<1x8xf32, #tpu.memory_space<vmem>>, %arg8: memref<128x8xf32, #tpu.memory_space<vmem>>, %arg9: memref<2x10x10x4xf32, #tpu.memory_space<vmem>>, %arg10: memref<2x10x10x8xf32, #tpu.memory_space<vmem>>) attributes {dimension_semantics = [#tpu.dimension_semantics<arbitrary>], iteration_bounds = array<i64: 1>, scalar_prefetch = 0 : i64, scratch_operands = 2 : i64, tpu.core_type = #tpu.core_type<tc>, window_params = [{pipeline_mode = #tpu.pipeline_mode<synchronous>, transform_indices = @transform_0, window_bounds = array<i64: 16, 2, 8, 8>}, {pipeline_mode = #tpu.pipeline_mode<synchronous>, transform_indices = @transform_1, window_bounds = array<i64: 36, 8>}, {pipeline_mode = #tpu.pipeline_mode<synchronous>, transform_indices = @transform_2, window_bounds = array<i64: 72, 8>}, {pipeline_mode = #tpu.pipeline_mode<synchronous>, transform_indices = @transform_3, window_bounds = array<i64: 1, 8>}, {pipeline_mode = #tpu.pipeline_mode<synchronous>, transform_indices = @transform_4, window_bounds = array<i64: 1, 8>}, {pipeline_mode = #tpu.pipeline_mode<synchronous>, transform_indices = @transform_5, window_bounds = array<i64: 1, 8>}, {pipeline_mode = #tpu.pipeline_mode<synchronous>, transform_indices = @transform_6, window_bounds = array<i64: 1, 8>}, {pipeline_mode = #tpu.pipeline_mode<synchronous>, transform_indices = @transform_7, window_bounds = array<i64: 128, 8>}]} {
    %c0 = arith.constant 0 : index
    %c0_0 = arith.constant 0 : index
    %c0_1 = arith.constant 0 : index
    %c0_2 = arith.constant 0 : index
    %0 = vector.load %arg1[%c0, %c0_0, %c0_1, %c0_2] : memref<16x2x8x8xf32, #tpu.memory_space<vmem>>, vector<16x2x8x8xf32>
    %1 = vector.extract_strided_slice %0 {offsets = [0, 0, 0, 0], sizes = [16, 1, 8, 8], strides = [1, 1, 1, 1]} : vector<16x2x8x8xf32> to vector<16x1x8x8xf32>
    %2 = vector.shape_cast %1 : vector<16x1x8x8xf32> to vector<16x8x8xf32>
    %3 = vector.extract_strided_slice %0 {offsets = [0, 1, 0, 0], sizes = [16, 1, 8, 8], strides = [1, 1, 1, 1]} : vector<16x2x8x8xf32> to vector<16x1x8x8xf32>
    %4 = vector.shape_cast %3 : vector<16x1x8x8xf32> to vector<16x8x8xf32>
    %5 = arith.maximumf %2, %4 : vector<16x8x8xf32>
    %6 = vector.extract_strided_slice %5 {offsets = [0, 0, 0], sizes = [16, 8, 4], strides = [1, 1, 1]} : vector<16x8x8xf32> to vector<16x8x4xf32>
    %7 = vector.extract_strided_slice %5 {offsets = [0, 0, 4], sizes = [16, 8, 4], strides = [1, 1, 1]} : vector<16x8x8xf32> to vector<16x8x4xf32>
    %8 = arith.maximumf %6, %7 : vector<16x8x4xf32>
    %cst = arith.constant 0.000000e+00 : f32
    %9 = vector.broadcast %cst : f32 to vector<2x10x10x4xf32>
    %c0_3 = arith.constant 0 : index
    %c0_4 = arith.constant 0 : index
    %c0_5 = arith.constant 0 : index
    %c0_6 = arith.constant 0 : index
    %10 = vector.load %arg9[%c0_3, %c0_4, %c0_5, %c0_6] : memref<2x10x10x4xf32, #tpu.memory_space<vmem>>, vector<2x10x10x4xf32>
    tpu.vector_store %arg9[%c0_3, %c0_4, %c0_5, %c0_6], %9 {strides = array<i32>} : memref<2x10x10x4xf32, #tpu.memory_space<vmem>>, vector<2x10x10x4xf32>,
    %11 = vector.shape_cast %8 : vector<16x8x4xf32> to vector<2x8x8x4xf32>
    %c0_7 = arith.constant 0 : index
    %c1 = arith.constant 1 : index
    %c1_8 = arith.constant 1 : index
    %c0_9 = arith.constant 0 : index
    %12 = vector.load %arg9[%c0_7, %c1, %c1_8, %c0_9] : memref<2x10x10x4xf32, #tpu.memory_space<vmem>>, vector<2x8x8x4xf32>
    tpu.vector_store %arg9[%c0_7, %c1, %c1_8, %c0_9], %11 {strides = array<i32>} : memref<2x10x10x4xf32, #tpu.memory_space<vmem>>, vector<2x8x8x4xf32>,
    %c0_10 = arith.constant 0 : index
    %c0_11 = arith.constant 0 : index
    %c0_12 = arith.constant 0 : index
    %c0_13 = arith.constant 0 : index
    %13 = vector.load %arg9[%c0_10, %c0_11, %c0_12, %c0_13] : memref<2x10x10x4xf32, #tpu.memory_space<vmem>>, vector<2x8x8x4xf32>
    %c0_14 = arith.constant 0 : index
    %c0_15 = arith.constant 0 : index
    %c1_16 = arith.constant 1 : index
    %c0_17 = arith.constant 0 : index
    %14 = vector.load %arg9[%c0_14, %c0_15, %c1_16, %c0_17] : memref<2x10x10x4xf32, #tpu.memory_space<vmem>>, vector<2x8x8x4xf32>
    %c0_18 = arith.constant 0 : index
    %c0_19 = arith.constant 0 : index
    %c2 = arith.constant 2 : index
    %c0_20 = arith.constant 0 : index
    %15 = vector.load %arg9[%c0_18, %c0_19, %c2, %c0_20] : memref<2x10x10x4xf32, #tpu.memory_space<vmem>>, vector<2x8x8x4xf32>
    %c0_21 = arith.constant 0 : index
    %c1_22 = arith.constant 1 : index
    %c0_23 = arith.constant 0 : index
    %c0_24 = arith.constant 0 : index
    %16 = vector.load %arg9[%c0_21, %c1_22, %c0_23, %c0_24] : memref<2x10x10x4xf32, #tpu.memory_space<vmem>>, vector<2x8x8x4xf32>
    %c0_25 = arith.constant 0 : index
    %c1_26 = arith.constant 1 : index
    %c1_27 = arith.constant 1 : index
    %c0_28 = arith.constant 0 : index
    %17 = vector.load %arg9[%c0_25, %c1_26, %c1_27, %c0_28] : memref<2x10x10x4xf32, #tpu.memory_space<vmem>>, vector<2x8x8x4xf32>
    %c0_29 = arith.constant 0 : index
    %c1_30 = arith.constant 1 : index
    %c2_31 = arith.constant 2 : index
    %c0_32 = arith.constant 0 : index
    %18 = vector.load %arg9[%c0_29, %c1_30, %c2_31, %c0_32] : memref<2x10x10x4xf32, #tpu.memory_space<vmem>>, vector<2x8x8x4xf32>
    %c0_33 = arith.constant 0 : index
    %c2_34 = arith.constant 2 : index
    %c0_35 = arith.constant 0 : index
    %c0_36 = arith.constant 0 : index
    %19 = vector.load %arg9[%c0_33, %c2_34, %c0_35, %c0_36] : memref<2x10x10x4xf32, #tpu.memory_space<vmem>>, vector<2x8x8x4xf32>
    %c0_37 = arith.constant 0 : index
    %c2_38 = arith.constant 2 : index
    %c1_39 = arith.constant 1 : index
    %c0_40 = arith.constant 0 : index
    %20 = vector.load %arg9[%c0_37, %c2_38, %c1_39, %c0_40] : memref<2x10x10x4xf32, #tpu.memory_space<vmem>>, vector<2x8x8x4xf32>
    %c0_41 = arith.constant 0 : index
    %c2_42 = arith.constant 2 : index
    %c2_43 = arith.constant 2 : index
    %c0_44 = arith.constant 0 : index
    %21 = vector.load %arg9[%c0_41, %c2_42, %c2_43, %c0_44] : memref<2x10x10x4xf32, #tpu.memory_space<vmem>>, vector<2x8x8x4xf32>
    %22 = tpu.concatenate %13, %14, %15, %16, %17, %18, %19, %20, %21 in 3 : vector<2x8x8x4xf32>, vector<2x8x8x4xf32>, vector<2x8x8x4xf32>, vector<2x8x8x4xf32>, vector<2x8x8x4xf32>, vector<2x8x8x4xf32>, vector<2x8x8x4xf32>, vector<2x8x8x4xf32>, vector<2x8x8x4xf32> -> vector<2x8x8x36xf32>
    %23 = vector.shape_cast %22 : vector<2x8x8x36xf32> to vector<128x36xf32>
    %c0_45 = arith.constant 0 : index
    %c0_46 = arith.constant 0 : index
    %24 = vector.load %arg2[%c0_45, %c0_46] : memref<36x8xf32, #tpu.memory_space<vmem>>, vector<36x8xf32>
    %cst_47 = arith.constant dense<0.000000e+00> : vector<128x8xf32>
    %25 = tpu.matmul %23, %24, %cst_47 {dimension_numbers = #tpu.dot_dimension_numbers<[1], [0], [0], [1], [0, 0, 1, 1], [], []>} : vector<128x36xf32>, vector<36x8xf32>, vector<128x8xf32> -> vector<128x8xf32>
    %c0_48 = arith.constant 0 : index
    %c0_49 = arith.constant 0 : index
    %26 = vector.load %arg4[%c0_48, %c0_49] : memref<1x8xf32, #tpu.memory_space<vmem>>, vector<1x8xf32>
    %c0_50 = arith.constant 0 : index
    %c0_51 = arith.constant 0 : index
    %27 = vector.load %arg5[%c0_50, %c0_51] : memref<1x8xf32, #tpu.memory_space<vmem>>, vector<1x8xf32>
    %cst_52 = arith.constant dense<0.000000e+00> : vector<8xf32>
    %28 = vector.multi_reduction <add>, %25, %cst_52 [0] : vector<128x8xf32> to vector<8xf32>
    %29 = vector.shape_cast %28 : vector<8xf32> to vector<1x8xf32>
    %cst_53 = arith.constant 1.280000e+02 : f32
    %30 = vector.broadcast %cst_53 : f32 to vector<1x8xf32>
    %31 = arith.divf %29, %30 : vector<1x8xf32>
    %32 = arith.mulf %25, %25 : vector<128x8xf32>
    %cst_54 = arith.constant dense<0.000000e+00> : vector<8xf32>
    %33 = vector.multi_reduction <add>, %32, %cst_54 [0] : vector<128x8xf32> to vector<8xf32>
    %34 = vector.shape_cast %33 : vector<8xf32> to vector<1x8xf32>
    %cst_55 = arith.constant 1.280000e+02 : f32
    %35 = vector.broadcast %cst_55 : f32 to vector<1x8xf32>
    %36 = arith.divf %34, %35 : vector<1x8xf32>
    %37 = arith.mulf %31, %31 : vector<1x8xf32>
    %38 = arith.subf %36, %37 : vector<1x8xf32>
    %cst_56 = arith.constant 0.000000e+00 : f32
    %39 = vector.broadcast %cst_56 : f32 to vector<1x8xf32>
    %40 = arith.maximumf %38, %39 : vector<1x8xf32>
    %cst_57 = arith.constant 9.99999974E-6 : f32
    %41 = vector.broadcast %cst_57 : f32 to vector<1x8xf32>
    %42 = arith.addf %40, %41 : vector<1x8xf32>
    %43 = math.rsqrt %42 : vector<1x8xf32>
    %44 = arith.mulf %26, %43 : vector<1x8xf32>
    %45 = arith.mulf %31, %44 : vector<1x8xf32>
    %46 = arith.subf %27, %45 : vector<1x8xf32>
    %47 = vector.broadcast %44 : vector<1x8xf32> to vector<128x8xf32>
    %48 = arith.mulf %25, %47 : vector<128x8xf32>
    %49 = vector.broadcast %46 : vector<1x8xf32> to vector<128x8xf32>
    %50 = arith.addf %48, %49 : vector<128x8xf32>
    %cst_58 = arith.constant 0.000000e+00 : f32
    %51 = vector.broadcast %cst_58 : f32 to vector<128x8xf32>
    %52 = arith.maximumf %50, %51 : vector<128x8xf32>
    %cst_59 = arith.constant 0.000000e+00 : f32
    %53 = vector.broadcast %cst_59 : f32 to vector<2x10x10x8xf32>
    %c0_60 = arith.constant 0 : index
    %c0_61 = arith.constant 0 : index
    %c0_62 = arith.constant 0 : index
    %c0_63 = arith.constant 0 : index
    %54 = vector.load %arg10[%c0_60, %c0_61, %c0_62, %c0_63] : memref<2x10x10x8xf32, #tpu.memory_space<vmem>>, vector<2x10x10x8xf32>
    tpu.vector_store %arg10[%c0_60, %c0_61, %c0_62, %c0_63], %53 {strides = array<i32>} : memref<2x10x10x8xf32, #tpu.memory_space<vmem>>, vector<2x10x10x8xf32>,
    %55 = vector.shape_cast %52 : vector<128x8xf32> to vector<2x8x8x8xf32>
    %c0_64 = arith.constant 0 : index
    %c1_65 = arith.constant 1 : index
    %c1_66 = arith.constant 1 : index
    %c0_67 = arith.constant 0 : index
    %56 = vector.load %arg10[%c0_64, %c1_65, %c1_66, %c0_67] : memref<2x10x10x8xf32, #tpu.memory_space<vmem>>, vector<2x8x8x8xf32>
    tpu.vector_store %arg10[%c0_64, %c1_65, %c1_66, %c0_67], %55 {strides = array<i32>} : memref<2x10x10x8xf32, #tpu.memory_space<vmem>>, vector<2x8x8x8xf32>,
    %c0_68 = arith.constant 0 : index
    %c0_69 = arith.constant 0 : index
    %c0_70 = arith.constant 0 : index
    %c0_71 = arith.constant 0 : index
    %57 = vector.load %arg10[%c0_68, %c0_69, %c0_70, %c0_71] : memref<2x10x10x8xf32, #tpu.memory_space<vmem>>, vector<2x8x8x8xf32>
    %c0_72 = arith.constant 0 : index
    %c0_73 = arith.constant 0 : index
    %c1_74 = arith.constant 1 : index
    %c0_75 = arith.constant 0 : index
    %58 = vector.load %arg10[%c0_72, %c0_73, %c1_74, %c0_75] : memref<2x10x10x8xf32, #tpu.memory_space<vmem>>, vector<2x8x8x8xf32>
    %c0_76 = arith.constant 0 : index
    %c0_77 = arith.constant 0 : index
    %c2_78 = arith.constant 2 : index
    %c0_79 = arith.constant 0 : index
    %59 = vector.load %arg10[%c0_76, %c0_77, %c2_78, %c0_79] : memref<2x10x10x8xf32, #tpu.memory_space<vmem>>, vector<2x8x8x8xf32>
    %c0_80 = arith.constant 0 : index
    %c1_81 = arith.constant 1 : index
    %c0_82 = arith.constant 0 : index
    %c0_83 = arith.constant 0 : index
    %60 = vector.load %arg10[%c0_80, %c1_81, %c0_82, %c0_83] : memref<2x10x10x8xf32, #tpu.memory_space<vmem>>, vector<2x8x8x8xf32>
    %c0_84 = arith.constant 0 : index
    %c1_85 = arith.constant 1 : index
    %c1_86 = arith.constant 1 : index
    %c0_87 = arith.constant 0 : index
    %61 = vector.load %arg10[%c0_84, %c1_85, %c1_86, %c0_87] : memref<2x10x10x8xf32, #tpu.memory_space<vmem>>, vector<2x8x8x8xf32>
    %c0_88 = arith.constant 0 : index
    %c1_89 = arith.constant 1 : index
    %c2_90 = arith.constant 2 : index
    %c0_91 = arith.constant 0 : index
    %62 = vector.load %arg10[%c0_88, %c1_89, %c2_90, %c0_91] : memref<2x10x10x8xf32, #tpu.memory_space<vmem>>, vector<2x8x8x8xf32>
    %c0_92 = arith.constant 0 : index
    %c2_93 = arith.constant 2 : index
    %c0_94 = arith.constant 0 : index
    %c0_95 = arith.constant 0 : index
    %63 = vector.load %arg10[%c0_92, %c2_93, %c0_94, %c0_95] : memref<2x10x10x8xf32, #tpu.memory_space<vmem>>, vector<2x8x8x8xf32>
    %c0_96 = arith.constant 0 : index
    %c2_97 = arith.constant 2 : index
    %c1_98 = arith.constant 1 : index
    %c0_99 = arith.constant 0 : index
    %64 = vector.load %arg10[%c0_96, %c2_97, %c1_98, %c0_99] : memref<2x10x10x8xf32, #tpu.memory_space<vmem>>, vector<2x8x8x8xf32>
    %c0_100 = arith.constant 0 : index
    %c2_101 = arith.constant 2 : index
    %c2_102 = arith.constant 2 : index
    %c0_103 = arith.constant 0 : index
    %65 = vector.load %arg10[%c0_100, %c2_101, %c2_102, %c0_103] : memref<2x10x10x8xf32, #tpu.memory_space<vmem>>, vector<2x8x8x8xf32>
    %66 = tpu.concatenate %57, %58, %59, %60, %61, %62, %63, %64, %65 in 3 : vector<2x8x8x8xf32>, vector<2x8x8x8xf32>, vector<2x8x8x8xf32>, vector<2x8x8x8xf32>, vector<2x8x8x8xf32>, vector<2x8x8x8xf32>, vector<2x8x8x8xf32>, vector<2x8x8x8xf32>, vector<2x8x8x8xf32> -> vector<2x8x8x72xf32>
    %67 = vector.shape_cast %66 : vector<2x8x8x72xf32> to vector<128x72xf32>
    %c0_104 = arith.constant 0 : index
    %c0_105 = arith.constant 0 : index
    %68 = vector.load %arg3[%c0_104, %c0_105] : memref<72x8xf32, #tpu.memory_space<vmem>>, vector<72x8xf32>
    %cst_106 = arith.constant dense<0.000000e+00> : vector<128x8xf32>
    %69 = tpu.matmul %67, %68, %cst_106 {dimension_numbers = #tpu.dot_dimension_numbers<[1], [0], [0], [1], [0, 0, 1, 1], [], []>} : vector<128x72xf32>, vector<72x8xf32>, vector<128x8xf32> -> vector<128x8xf32>
    %c0_107 = arith.constant 0 : index
    %c0_108 = arith.constant 0 : index
    %70 = vector.load %arg6[%c0_107, %c0_108] : memref<1x8xf32, #tpu.memory_space<vmem>>, vector<1x8xf32>
    %c0_109 = arith.constant 0 : index
    %c0_110 = arith.constant 0 : index
    %71 = vector.load %arg7[%c0_109, %c0_110] : memref<1x8xf32, #tpu.memory_space<vmem>>, vector<1x8xf32>
    %cst_111 = arith.constant dense<0.000000e+00> : vector<8xf32>
    %72 = vector.multi_reduction <add>, %69, %cst_111 [0] : vector<128x8xf32> to vector<8xf32>
    %73 = vector.shape_cast %72 : vector<8xf32> to vector<1x8xf32>
    %cst_112 = arith.constant 1.280000e+02 : f32
    %74 = vector.broadcast %cst_112 : f32 to vector<1x8xf32>
    %75 = arith.divf %73, %74 : vector<1x8xf32>
    %76 = arith.mulf %69, %69 : vector<128x8xf32>
    %cst_113 = arith.constant dense<0.000000e+00> : vector<8xf32>
    %77 = vector.multi_reduction <add>, %76, %cst_113 [0] : vector<128x8xf32> to vector<8xf32>
    %78 = vector.shape_cast %77 : vector<8xf32> to vector<1x8xf32>
    %cst_114 = arith.constant 1.280000e+02 : f32
    %79 = vector.broadcast %cst_114 : f32 to vector<1x8xf32>
    %80 = arith.divf %78, %79 : vector<1x8xf32>
    %81 = arith.mulf %75, %75 : vector<1x8xf32>
    %82 = arith.subf %80, %81 : vector<1x8xf32>
    %cst_115 = arith.constant 0.000000e+00 : f32
    %83 = vector.broadcast %cst_115 : f32 to vector<1x8xf32>
    %84 = arith.maximumf %82, %83 : vector<1x8xf32>
    %cst_116 = arith.constant 9.99999974E-6 : f32
    %85 = vector.broadcast %cst_116 : f32 to vector<1x8xf32>
    %86 = arith.addf %84, %85 : vector<1x8xf32>
    %87 = math.rsqrt %86 : vector<1x8xf32>
    %88 = arith.mulf %70, %87 : vector<1x8xf32>
    %89 = arith.mulf %75, %88 : vector<1x8xf32>
    %90 = arith.subf %71, %89 : vector<1x8xf32>
    %91 = vector.broadcast %88 : vector<1x8xf32> to vector<128x8xf32>
    %92 = arith.mulf %69, %91 : vector<128x8xf32>
    %93 = vector.broadcast %90 : vector<1x8xf32> to vector<128x8xf32>
    %94 = arith.addf %92, %93 : vector<128x8xf32>
    %cst_117 = arith.constant 0.000000e+00 : f32
    %95 = vector.broadcast %cst_117 : f32 to vector<128x8xf32>
    %96 = arith.maximumf %94, %95 : vector<128x8xf32>
    %c0_118 = arith.constant 0 : index
    %c0_119 = arith.constant 0 : index
    %97 = vector.load %arg8[%c0_118, %c0_119] : memref<128x8xf32, #tpu.memory_space<vmem>>, vector<128x8xf32>
    tpu.vector_store %arg8[%c0_118, %c0_119], %96 {strides = array<i32>} : memref<128x8xf32, #tpu.memory_space<vmem>>, vector<128x8xf32>,
    return
  }
  func.func @transform_0(%arg0: i32) -> (i32, i32, i32, i32) {
    %c0_i32 = arith.constant 0 : i32
    %c0_i32_0 = arith.constant 0 : i32
    %c0_i32_1 = arith.constant 0 : i32
    %c0_i32_2 = arith.constant 0 : i32
    %c0_i32_3 = arith.constant 0 : i32
    return %c0_i32, %c0_i32_0, %c0_i32_1, %c0_i32_2 : i32, i32, i32, i32
  }
  func.func @transform_1(%arg0: i32) -> (i32, i32) {
    %c0_i32 = arith.constant 0 : i32
    %c0_i32_0 = arith.constant 0 : i32
    %c0_i32_1 = arith.constant 0 : i32
    return %c0_i32, %c0_i32_0 : i32, i32
  }
  func.func @transform_2(%arg0: i32) -> (i32, i32) {
    %c0_i32 = arith.constant 0 : i32
    %c0_i32_0 = arith.constant 0 : i32
    %c0_i32_1 = arith.constant 0 : i32
    return %c0_i32, %c0_i32_0 : i32, i32
  }
  func.func @transform_3(%arg0: i32) -> (i32, i32) {
    %c0_i32 = arith.constant 0 : i32
    %c0_i32_0 = arith.constant 0 : i32
    %c0_i32_1 = arith.constant 0 : i32
    return %c0_i32, %c0_i32_0 : i32, i32
  }
  func.func @transform_4(%arg0: i32) -> (i32, i32) {
    %c0_i32 = arith.constant 0 : i32
    %c0_i32_0 = arith.constant 0 : i32
    %c0_i32_1 = arith.constant 0 : i32
    return %c0_i32, %c0_i32_0 : i32, i32
  }
  func.func @transform_5(%arg0: i32) -> (i32, i32) {
    %c0_i32 = arith.constant 0 : i32
    %c0_i32_0 = arith.constant 0 : i32
    %c0_i32_1 = arith.constant 0 : i32
    return %c0_i32, %c0_i32_0 : i32, i32
  }
  func.func @transform_6(%arg0: i32) -> (i32, i32) {
    %c0_i32 = arith.constant 0 : i32
    %c0_i32_0 = arith.constant 0 : i32
    %c0_i32_1 = arith.constant 0 : i32
    return %c0_i32, %c0_i32_0 : i32, i32
  }
  func.func @transform_7(%arg0: i32) -> (i32, i32) {
    %c0_i32 = arith.constant 0 : i32
    %c0_i32_0 = arith.constant 0 : i32
    %c0_i32_1 = arith.constant 0 : i32
    return %c0_i32, %c0_i32_0 : i32, i32
  }
}

</mosaic_0001>

<bundles_post_ra>
// kernel: down_forward.1
= control target key start
LH: loop header
LB: loop body
LE: loop exit
PB: predicated region body
PF: predicated region fallthrough
CT: control target
= control target key end

     0   :  { %vm154_vm0 = vcmask 31744   ;;  %vm156_vm1 = vcmask 25600   ;;  %v2810_v3 = vmov 0.0   ;;  %s2811_s17 = smov 124   ;;  %s2812_s22 = smov 4   ;;  %vm886_vm2 = vcmask 64512   ;;  %s4492_s0 = inlined_call_operand.vmem [shape: f32[16,2,8,8], index: 0, kind: input, shape index: {}]   ;;  %s4493_s1 = inlined_call_operand.vmem [shape: f32[36,8], index: 1, kind: input, shape index: {}]   ;;  %s4494_s3 = inlined_call_operand.vmem [shape: f32[1,8], index: 3, kind: input, shape index: {}]   ;;  %s4495_s4 = inlined_call_operand.vmem [shape: f32[1,8], index: 4, kind: input, shape index: {}]   ;;  %s4496_s2 = inlined_call_operand.vmem [shape: f32[72,8], index: 2, kind: input, shape index: {}]   ;;  %s4497_s5 = inlined_call_operand.vmem [shape: f32[1,8], index: 5, kind: input, shape index: {}]   ;;  %s4498_s6 = inlined_call_operand.vmem [shape: f32[1,8], index: 6, kind: input, shape index: {}]   ;;  %s4499_s7 = inlined_call_operand.vmem [shape: f32[128,8], index: 7, kind: output, shape index: {}]  }
   0x1   :  { %v26_v0 = vld [vmem:[%s4492_s0] sm:$0xff]  ;;  %v27_v1 = vld [vmem:[%s4492_s0 + $0x8] sm:$0xff]  ;;  %v28_v2 = vld [vmem:[%s4492_s0 + $0x10] sm:$0xff]  ;;  %158 = vst.msk [vmem:[#allocation2 + $0x10] sm:$0xff] %vm154_vm0, %v2810_v3  ;;  %s2815_s23 = smov 16   ;;  %s2816_s24 = smov 20  }
   0x2   :  { %159 = vst.msk [vmem:[#allocation2 + $0x18] sm:$0x3] %vm156_vm1, %v2810_v3  ;;  %157 = vst.msk [vmem:[#allocation2 + $0x8] sm:$0x3] %vm156_vm1, %v2810_v3  ;;  %v2953_v4 = vmax.f32 %v26_v0, %v27_v1  ;;  %v29_v5 = vld [vmem:[%s4492_s0 + $0x18] sm:$0xff]  ;;  %v30_v6 = vld [vmem:[%s4492_s0 + $0x20] sm:$0xff] }
   0x3   :  { %155 = vst.msk [vmem:[#allocation2] sm:$0xff] %vm154_vm0, %v2810_v3  ;;  %160 = vst.msk [vmem:[#allocation2 + $0x20] sm:$0xff] %vm154_vm0, %v2810_v3  ;;  %v31_v7 = vld [vmem:[%s4492_s0 + $0x28] sm:$0xff]  ;;  %v32_v9 = vld [vmem:[%s4492_s0 + $0x30] sm:$0xff]  ;;  %v2974_v11 = vmax.f32 %v28_v2, %v29_v5  ;;  %s2817_s29 = smov 24   ;;  %s2818_s11 = smov 28  }
   0x4   :  { %161 = vst.msk [vmem:[#allocation2 + $0x28] sm:$0x3] %vm156_vm1, %v2810_v3  ;;  %163 = vst.msk [vmem:[#allocation2 + $0x38] sm:$0x3] %vm156_vm1, %v2810_v3  ;;  %v2964_v8 = vmax.f32 %v30_v6, %v31_v7  ;;  %v33_v10 = vld [vmem:[%s4492_s0 + $0x38] sm:$0xff]  ;;  %90 = vrot.lane.b32.xlu0 %v2953_v4, %s2811_s17  ;;  %v34_v13 = vld [vmem:[%s4492_s0 + $0x40] sm:$0xff] }
   0x5   :  { %162 = vst.msk [vmem:[#allocation2 + $0x30] sm:$0xff] %vm154_vm0, %v2810_v3  ;;  %164 = vst.msk [vmem:[#allocation2 + $0x40] sm:$0xff] %vm154_vm0, %v2810_v3  ;;  %v2978_v12 = vmax.f32 %v32_v9, %v33_v10  ;;  %v35_v14 = vld [vmem:[%s4492_s0 + $0x48] sm:$0xff]  ;;  %v36_v15 = vld [vmem:[%s4492_s0 + $0x50] sm:$0xff]  ;;  %vm1059_vm3 = vcmask 1043456   ;;  %s2819_s14 = smov 32  }
   0x6   :  { %165 = vst.msk [vmem:[#allocation2 + $0x48] sm:$0x3] %vm156_vm1, %v2810_v3  ;;  %167 = vst.msk [vmem:[#allocation2 + $0x58] sm:$0x3] %vm156_vm1, %v2810_v3  ;;  %94 = vrot.lane.b32.xlu1 %v2964_v8, %s2811_s17  ;;  %v37_v16 = vld [vmem:[%s4492_s0 + $0x58] sm:$0xff]  ;;  %v2994_v17 = vmax.f32 %v34_v13, %v35_v14  ;;  %v38_v19 = vld [vmem:[%s4492_s0 + $0x60] sm:$0xff] }
   0x7   :  { %166 = vst.msk [vmem:[#allocation2 + $0x50] sm:$0xff] %vm154_vm0, %v2810_v3  ;;  %168 = vst.msk [vmem:[#allocation2 + $0x60] sm:$0xff] %vm154_vm0, %v2810_v3  ;;  %v2998_v18 = vmax.f32 %v36_v15, %v37_v16  ;;  %v39_v20 = vld [vmem:[%s4492_s0 + $0x68] sm:$0xff]  ;;  %v40_v21 = vld [vmem:[%s4492_s0 + $0x70] sm:$0xff]  ;;  %vm903_vm4 = vcmask 97280   ;;  %vm920_vm5 = vcmask 130048  }
   0x8   :  { %169 = vst.msk [vmem:[#allocation2 + $0x68] sm:$0x3] %vm156_vm1, %v2810_v3  ;;  %171 = vst.msk [vmem:[#allocation2 + $0x78] sm:$0x3] %vm156_vm1, %v2810_v3  ;;  %92 = vrot.lane.b32.xlu0 %v2974_v11, %s2811_s17  ;;  %v41_v22 = vld [vmem:[%s4492_s0 + $0x78] sm:$0xff]  ;;  %v3014_v23 = vmax.f32 %v38_v19, %v39_v20  ;;  %v42_v25 = vld [vmem:[%s4492_s0 + $0x80] sm:$0xff] }
   0x9   :  { %170 = vst.msk [vmem:[#allocation2 + $0x70] sm:$0xff] %vm154_vm0, %v2810_v3  ;;  %172 = vst.msk [vmem:[#allocation2 + $0x80] sm:$0xff] %vm154_vm0, %v2810_v3  ;;  %v3018_v24 = vmax.f32 %v40_v21, %v41_v22  ;;  %v43_v26 = vld [vmem:[%s4492_s0 + $0x88] sm:$0xff]  ;;  %v44_v27 = vld [vmem:[%s4492_s0 + $0x90] sm:$0xff]  ;;  %vm937_vm6 = vcmask 162816   ;;  %vm954_vm7 = vcmask 195584  }
   0xa   :  { %173 = vst.msk [vmem:[#allocation2 + $0x88] sm:$0x3] %vm156_vm1, %v2810_v3  ;;  %175 = vst.msk [vmem:[#allocation2 + $0x98] sm:$0x3] %vm156_vm1, %v2810_v3  ;;  %96 = vrot.lane.b32.xlu1 %v2978_v12, %s2811_s17  ;;  %v45_v28 = vld [vmem:[%s4492_s0 + $0x98] sm:$0xff]  ;;  %v3034_v29 = vmax.f32 %v42_v25, %v43_v26  ;;  %v46_v30 = vld [vmem:[%s4492_s0 + $0xa0] sm:$0xff] }
   0xb   :  { %174 = vst.msk [vmem:[#allocation2 + $0x90] sm:$0xff] %vm154_vm0, %v2810_v3  ;;  %176 = vst.msk [vmem:[#allocation2 + $0xa0] sm:$0xff] %vm154_vm0, %v2810_v3  ;;  %v47_v31 = vld [vmem:[%s4492_s0 + $0xa8] sm:$0xff]  ;;  %v3044_v32 = vmax.f32 %v44_v27, %v45_v28  ;;  %v48_v33 = vld [vmem:[%s4492_s0 + $0xb0] sm:$0xff]  ;;  %vm971_vm8 = vcmask 228352   ;;  %vm988_vm9 = vcmask 261120  }
   0xc   :  { %177 = vst.msk [vmem:[#allocation2 + $0xa8] sm:$0x3] %vm156_vm1, %v2810_v3  ;;  %179 = vst.msk [vmem:[#allocation2 + $0xb8] sm:$0x3] %vm156_vm1, %v2810_v3  ;;  %98 = vrot.lane.b32.xlu0 %v2994_v17, %s2811_s17  ;;  %v49_v34 = vld [vmem:[%s4492_s0 + $0xb8] sm:$0xff]  ;;  %v3054_v35 = vmax.f32 %v46_v30, %v47_v31  ;;  %v50_v36 = vld [vmem:[%s4492_s0 + $0xc0] sm:$0xff] }
   0xd   :  { %178 = vst.msk [vmem:[#allocation2 + $0xb0] sm:$0xff] %vm154_vm0, %v2810_v3  ;;  %180 = vst.msk [vmem:[#allocation2 + $0xc0] sm:$0xff] %vm154_vm0, %v2810_v3  ;;  %v51_v37 = vld [vmem:[%s4492_s0 + $0xc8] sm:$0xff]  ;;  %v3064_v38 = vmax.f32 %v48_v33, %v49_v34  ;;  %v52_v39 = vld [vmem:[%s4492_s0 + $0xd0] sm:$0xff]  ;;  %vm1010_vm10 = vcmask 293888   ;;  %vm1372_vm11 = vcmask 58368  }
   0xe   :  { %181 = vst.msk [vmem:[#allocation2 + $0xc8] sm:$0x3] %vm156_vm1, %v2810_v3  ;;  %183 = vst.msk [vmem:[#allocation2 + $0xd8] sm:$0x3] %vm156_vm1, %v2810_v3  ;;  %100 = vrot.lane.b32.xlu1 %v2998_v18, %s2811_s17  ;;  %v53_v40 = vld [vmem:[%s4492_s0 + $0xd8] sm:$0xff]  ;;  %v3074_v41 = vmax.f32 %v50_v36, %v51_v37  ;;  %v54_v42 = vld [vmem:[%s4492_s0 + $0xe0] sm:$0xff] }
   0xf   :  { %182 = vst.msk [vmem:[#allocation2 + $0xd0] sm:$0xff] %vm154_vm0, %v2810_v3  ;;  %184 = vst.msk [vmem:[#allocation2 + $0xe0] sm:$0xff] %vm154_vm0, %v2810_v3  ;;  %v55_v43 = vld [vmem:[%s4492_s0 + $0xe8] sm:$0xff]  ;;  %v3084_v44 = vmax.f32 %v52_v39, %v53_v40  ;;  %v56_v45 = vld [vmem:[%s4492_s0 + $0xf0] sm:$0xff]  ;;  %s2821_s15 = smov 48   ;;  %s2822_s16 = smov 56  }
  0x10   :  { %185 = vst.msk [vmem:[#allocation2 + $0xe8] sm:$0x3] %vm156_vm1, %v2810_v3  ;;  %187 = vst.msk [vmem:[#allocation2 + $0xf8] sm:$0x3] %vm156_vm1, %v2810_v3  ;;  %102 = vrot.lane.b32.xlu0 %v3014_v23, %s2811_s17  ;;  %v57_v46 = vld [vmem:[%s4492_s0 + $0xf8] sm:$0xff]  ;;  %v3094_v47 = vmax.f32 %v54_v42, %v55_v43  ;;  %v229_v49 = vld [vmem:[#allocation2 + $0x1] sm:$0xff] }
  0x11   :  { %186 = vst.msk [vmem:[#allocation2 + $0xf0] sm:$0xff] %vm154_vm0, %v2810_v3  ;;  %188 = vst.msk [vmem:[#allocation2 + $0x100] sm:$0xff] %vm154_vm0, %v2810_v3  ;;  %v3098_v48 = vmax.f32 %v56_v45, %v57_v46  ;;  %v245_v50 = vld [vmem:[#allocation2 + $0x2] sm:$0xff]  ;;  %s2813_s0 = smov 8   ;;  %v1007_v33 = vld [vmem:[%s4493_s1 + $0x10] sm:$0xff]  ;;  %vm2150_vm12 = vcmask 326656  }
  0x12   :  { %189 = vst.msk [vmem:[#allocation2 + $0x108] sm:$0x3] %vm156_vm1, %v2810_v3  ;;  %191 = vst.msk [vmem:[#allocation2 + $0x118] sm:$0x3] %vm156_vm1, %v2810_v3  ;;  %104 = vrot.lane.b32.xlu1 %v3018_v24, %s2811_s17  ;;  %v1006_v30 = vld [vmem:[%s4493_s1 + $0x8] sm:$0xff]  ;;  %v1008_v34 = vld [vmem:[%s4493_s1 + $0x18] sm:$0xff] }
  0x13   :  { %190 = vst.msk [vmem:[#allocation2 + $0x110] sm:$0xff] %vm154_vm0, %v2810_v3  ;;  %192 = vst.msk [vmem:[#allocation2 + $0x120] sm:$0xff] %vm154_vm0, %v2810_v3  ;;  %v1009_v36 = vld [vmem:[%s4493_s1 + $0x20] sm:$0xf]  ;;  %vm2167_vm13 = vcmask 392192   ;;  %vm2184_vm14 = vcmask 457728  }
  0x14   :  { %193 = vst.msk [vmem:[#allocation2 + $0x128] sm:$0x3] %vm156_vm1, %v2810_v3  ;;  %195 = vst.msk [vmem:[#allocation2 + $0x138] sm:$0x3] %vm156_vm1, %v2810_v3  ;;  %106 = vrot.lane.b32.xlu0 %v3034_v29, %s2811_s17  ;;  %vm2201_vm15 = vcmask 523264  }
  0x15   :  { %194 = vst.msk [vmem:[#allocation2 + $0x130] sm:$0xff] %vm154_vm0, %v2810_v3 }
  0x16   :  { %108 = vrot.lane.b32.xlu1 %v3044_v32, %s2811_s17  ;;  %1371 = vst.msk [vmem:[#allocation3] sm:$0xff] %vm886_vm2, %v2810_v3  ;;  %1374 = vst.msk [vmem:[#allocation3 + $0x10] sm:$0xff] %vm886_vm2, %v2810_v3 }
  0x17   :  { %1376 = vst.msk [vmem:[#allocation3 + $0x20] sm:$0xff] %vm886_vm2, %v2810_v3  ;;  %1378 = vst.msk [vmem:[#allocation3 + $0x30] sm:$0xff] %vm886_vm2, %v2810_v3 }
  0x18   :  { %110 = vrot.lane.b32.xlu0 %v3054_v35, %s2811_s17  ;;  %1380 = vst.msk [vmem:[#allocation3 + $0x40] sm:$0xff] %vm886_vm2, %v2810_v3  ;;  %1382 = vst.msk [vmem:[#allocation3 + $0x50] sm:$0xff] %vm886_vm2, %v2810_v3 }
  0x19   :  { %1384 = vst.msk [vmem:[#allocation3 + $0x60] sm:$0xff] %vm886_vm2, %v2810_v3  ;;  %1386 = vst.msk [vmem:[#allocation3 + $0x70] sm:$0xff] %vm886_vm2, %v2810_v3 }
  0x1a   :  { %112 = vrot.lane.b32.xlu1 %v3064_v38, %s2811_s17  ;;  %1388 = vst.msk [vmem:[#allocation3 + $0x80] sm:$0xff] %vm886_vm2, %v2810_v3  ;;  %1390 = vst.msk [vmem:[#allocation3 + $0x90] sm:$0xff] %vm886_vm2, %v2810_v3 }
  0x1b   :  { %1392 = vst.msk [vmem:[#allocation3 + $0xa0] sm:$0xff] %vm886_vm2, %v2810_v3  ;;  %1394 = vst.msk [vmem:[#allocation3 + $0xb0] sm:$0xff] %vm886_vm2, %v2810_v3 }
  0x1c   :  { %114 = vrot.lane.b32.xlu0 %v3074_v41, %s2811_s17  ;;  %1396 = vst.msk [vmem:[#allocation3 + $0xc0] sm:$0xff] %vm886_vm2, %v2810_v3  ;;  %1398 = vst.msk [vmem:[#allocation3 + $0xd0] sm:$0xff] %vm886_vm2, %v2810_v3 }
  0x1d   :  { %1400 = vst.msk [vmem:[#allocation3 + $0xe0] sm:$0xff] %vm886_vm2, %v2810_v3  ;;  %1402 = vst.msk [vmem:[#allocation3 + $0xf0] sm:$0xff] %vm886_vm2, %v2810_v3 }
  0x1e   :  { %116 = vrot.lane.b32.xlu1 %v3084_v44, %s2811_s17  ;;  %1404 = vst.msk [vmem:[#allocation3 + $0x100] sm:$0xff] %vm886_vm2, %v2810_v3  ;;  %1406 = vst.msk [vmem:[#allocation3 + $0x110] sm:$0xff] %vm886_vm2, %v2810_v3 }
  0x1f   :  { %1408 = vst.msk [vmem:[#allocation3 + $0x120] sm:$0xff] %vm886_vm2, %v2810_v3  ;;  %1410 = vst.msk [vmem:[#allocation3 + $0x130] sm:$0xff] %vm886_vm2, %v2810_v3 }
  0x20   :  { %118 = vrot.lane.b32.xlu0 %v3094_v47, %s2811_s17  ;;  %1407 = vst.msk [vmem:[#allocation3 + $0x118] sm:$0x3] %vm1372_vm11, %v2810_v3  ;;  %1373 = vst.msk [vmem:[#allocation3 + $0x8] sm:$0x3] %vm1372_vm11, %v2810_v3 }
  0x21   :  { %1375 = vst.msk [vmem:[#allocation3 + $0x18] sm:$0x3] %vm1372_vm11, %v2810_v3  ;;  %1377 = vst.msk [vmem:[#allocation3 + $0x28] sm:$0x3] %vm1372_vm11, %v2810_v3 }
  0x22   :  { %120 = vrot.lane.b32.xlu1 %v3098_v48, %s2811_s17  ;;  %s2814_s17 = smov 12   ;;  %1379 = vst.msk [vmem:[#allocation3 + $0x38] sm:$0x3] %vm1372_vm11, %v2810_v3  ;;  %1381 = vst.msk [vmem:[#allocation3 + $0x48] sm:$0x3] %vm1372_vm11, %v2810_v3 }
  0x23   :  { %1383 = vst.msk [vmem:[#allocation3 + $0x58] sm:$0x3] %vm1372_vm11, %v2810_v3  ;;  %1385 = vst.msk [vmem:[#allocation3 + $0x68] sm:$0x3] %vm1372_vm11, %v2810_v3 }
  0x24   :  { %374 = vrot.lane.b32.xlu0 %v229_v49, %s2812_s22  ;;  %v237_v49 = vld [vmem:[#allocation2 + $0xa1] sm:$0xff]  ;;  %1387 = vst.msk [vmem:[#allocation3 + $0x78] sm:$0x3] %vm1372_vm11, %v2810_v3  ;;  %1389 = vst.msk [vmem:[#allocation3 + $0x88] sm:$0x3] %vm1372_vm11, %v2810_v3 }
  0x25   :  { %1391 = vst.msk [vmem:[#allocation3 + $0x98] sm:$0x3] %vm1372_vm11, %v2810_v3  ;;  %1393 = vst.msk [vmem:[#allocation3 + $0xa8] sm:$0x3] %vm1372_vm11, %v2810_v3 }
  0x26   :  { %1395 = vst.msk [vmem:[#allocation3 + $0xb8] sm:$0x3] %vm1372_vm11, %v2810_v3  ;;  %1397 = vst.msk [vmem:[#allocation3 + $0xc8] sm:$0x3] %vm1372_vm11, %v2810_v3 }
  0x27   :  { %1399 = vst.msk [vmem:[#allocation3 + $0xd8] sm:$0x3] %vm1372_vm11, %v2810_v3  ;;  %1401 = vst.msk [vmem:[#allocation3 + $0xe8] sm:$0x3] %vm1372_vm11, %v2810_v3 }
  0x28   :  { %438 = vrot.lane.b32.xlu0 %v245_v50, %s2813_s0  ;;  %1403 = vst.msk [vmem:[#allocation3 + $0xf8] sm:$0x3] %vm1372_vm11, %v2810_v3  ;;  %1405 = vst.msk [vmem:[#allocation3 + $0x108] sm:$0x3] %vm1372_vm11, %v2810_v3 }
  0x29   :  { %1409 = vst.msk [vmem:[#allocation3 + $0x128] sm:$0x3] %vm1372_vm11, %v2810_v3  ;;  %1411 = vst.msk [vmem:[#allocation3 + $0x138] sm:$0x3] %vm1372_vm11, %v2810_v3  ;;  %v1533_v3 = vld [vmem:[#allocation3 + $0x90] sm:$0xff] }
  0x76   :  { %v91_v51 = vpop.permute.xlu0 %90 }
  0x77   :  { %v138_v52 = vmax.f32 %v2953_v4, %v91_v51 }
  0x78   :  { %v95_v53 = vpop.permute.xlu1 %94 }
  0x79   :  { %v140_v54 = vmax.f32 %v2964_v8, %v95_v53  ;;  %197 = vst.msk [vmem:[#allocation2 + $0x11] sm:$0xff] %vm154_vm0, %v138_v52 }
  0x7a   :  { %v93_v55 = vpop.permute.xlu0 %92 }
  0x7b   :  { %199 = vst.msk [vmem:[#allocation2 + $0x31] sm:$0xff] %vm154_vm0, %v140_v54  ;;  %v139_v56 = vmax.f32 %v2974_v11, %v93_v55  ;;  %v253_v55 = vld [vmem:[#allocation2 + $0xa2] sm:$0xff] }
  0x7c   :  { %v97_v57 = vpop.permute.xlu1 %96 }
  0x7d   :  { %v141_v58 = vmax.f32 %v2978_v12, %v97_v57  ;;  %198 = vst.msk [vmem:[#allocation2 + $0x21] sm:$0xff] %vm154_vm0, %v139_v56 }
  0x7e   :  { %v99_v59 = vpop.permute.xlu0 %98 }
  0x7f   :  { %200 = vst.msk [vmem:[#allocation2 + $0x41] sm:$0xff] %vm154_vm0, %v141_v58  ;;  %v142_v60 = vmax.f32 %v2994_v17, %v99_v59  ;;  %v317_v59 = vld [vmem:[#allocation2 + $0x90] sm:$0xff] }
  0x80   :  { %v101_v61 = vpop.permute.xlu1 %100  ;;  %v3155_v62 = vld [vmem:[#allocation2 + $0x10] sm:$0xff] }
  0x81   :  { %v230_v63 = vld [vmem:[#allocation2 + $0x11] sm:$0xff]  ;;  %v143_v0 = vmax.f32 %v2998_v18, %v101_v61  ;;  %502 = vrot.lane.b32.xlu0 %v3155_v62, %s2814_s17  ;;  %201 = vst.msk [vmem:[#allocation2 + $0x51] sm:$0xff] %vm154_vm0, %v142_v60 }
  0x82   :  { %376 = vrot.lane.b32.xlu1 %v230_v63, %s2812_s22  ;;  %v103_v1 = vpop.permute.xlu0 %102  ;;  %v246_v5 = vld [vmem:[#allocation2 + $0x12] sm:$0xff] }
  0x83   :  { %202 = vst.msk [vmem:[#allocation2 + $0x61] sm:$0xff] %vm154_vm0, %v143_v0  ;;  %v144_v2 = vmax.f32 %v3014_v23, %v103_v1  ;;  %v232_v13 = vld [vmem:[#allocation2 + $0x31] sm:$0xff] }
  0x84   :  { %v105_v4 = vpop.permute.xlu1 %104  ;;  %v278_v7 = vld [vmem:[#allocation2 + $0x21] sm:$0xff]  ;;  %v248_v23 = vld [vmem:[#allocation2 + $0x32] sm:$0xff] }
  0x85   :  { %v145_v6 = vmax.f32 %v3018_v24, %v105_v4  ;;  %566 = vrot.lane.b32.xlu0 %v230_v63, %s2815_s23  ;;  %203 = vst.msk [vmem:[#allocation2 + $0x71] sm:$0xff] %vm154_vm0, %v144_v2  ;;  %v3168_v8 = vld [vmem:[#allocation2 + $0x20] sm:$0xff]  ;;  %v3196_v28 = vld [vmem:[#allocation2 + $0x30] sm:$0xff] }
  0x86   :  { %440 = vrot.lane.b32.xlu1 %v246_v5, %s2813_s0  ;;  %v107_v9 = vpop.permute.xlu0 %106  ;;  %v294_v21 = vld [vmem:[#allocation2 + $0x22] sm:$0xff]  ;;  %v333_v4 = vld [vmem:[#allocation2 + $0x91] sm:$0xff] }
  0x87   :  { %204 = vst.msk [vmem:[#allocation2 + $0x81] sm:$0xff] %vm154_vm0, %v145_v6  ;;  %v146_v10 = vmax.f32 %v3034_v29, %v107_v9  ;;  %v1005_v29 = vld [vmem:[%s4493_s1] sm:$0xff]  ;;  %s2820_s1 = smov 64  }
  0x88   :  { %v109_v11 = vpop.permute.xlu1 %108  ;;  %v2758_v31 = vpack.c.bf16 %v1006_v30, %v1005_v29  ;;  %v233_v37 = vld [vmem:[#allocation2 + $0x41] sm:$0xff]  ;;  %v250_v40 = vld [vmem:[#allocation2 + $0x52] sm:$0xff] }
  0x89   :  { %v147_v12 = vmax.f32 %v3044_v32, %v109_v11  ;;  %568 = vrot.lane.b32.xlu0 %v278_v7, %s2815_s23  ;;  %205 = vst.msk [vmem:[#allocation2 + $0xb1] sm:$0xff] %vm154_vm0, %v146_v10  ;;  %v3208_v32 = vld [vmem:[#allocation2 + $0x40] sm:$0xff] }
  0x8a   :  { %504 = vrot.lane.b32.xlu1 %v3168_v8, %s2814_s17  ;;  %v111_v14 = vpop.permute.xlu0 %110  ;;  %2759 = vmatprep.subr.bf16.mxu0 %v2758_v31  ;;  %v296_v39 = vld [vmem:[#allocation2 + $0x42] sm:$0xff] }
  0x8b   :  { %206 = vst.msk [vmem:[#allocation2 + $0xc1] sm:$0xff] %vm154_vm0, %v147_v12  ;;  %v148_v15 = vmax.f32 %v3054_v35, %v111_v14  ;;  %2761 = vmatpush3.bf16.msra.mxu0 %v2758_v31  ;;  %v2762_v35 = vpack.c.bf16 %v1008_v34, %v1007_v33  ;;  %v3241_v42 = vld [vmem:[#allocation2 + $0x60] sm:$0xff] }
  0x8c   :  { %v113_v16 = vpop.permute.xlu1 %112  ;;  %v235_v43 = vld [vmem:[#allocation2 + $0x61] sm:$0xff]  ;;  %v252_v46 = vld [vmem:[#allocation2 + $0x72] sm:$0xff] }
  0x8d   :  { %v149_v17 = vmax.f32 %v3064_v38, %v113_v16  ;;  %380 = vrot.lane.b32.xlu0 %v232_v13, %s2812_s22  ;;  %207 = vst.msk [vmem:[#allocation2 + $0xd1] sm:$0xff] %vm154_vm0, %v148_v15  ;;  %2763 = vmatprep.subr.bf16.mxu0 %v2762_v35  ;;  %v234_v38 = vld [vmem:[#allocation2 + $0x51] sm:$0xff]  ;;  %v298_v45 = vld [vmem:[#allocation2 + $0x62] sm:$0xff] }
  0x8e   :  { %378 = vrot.lane.b32.xlu1 %v278_v7, %s2812_s22  ;;  %v115_v18 = vpop.permute.xlu0 %114  ;;  %v284_v52 = vld [vmem:[#allocation2 + $0x81] sm:$0xff] }
  0x8f   :  { %208 = vst.msk [vmem:[#allocation2 + $0xe1] sm:$0xff] %vm154_vm0, %v149_v17  ;;  %v150_v19 = vmax.f32 %v3074_v41, %v115_v18  ;;  %2765 = vmatpush3.bf16.msra.mxu0 %v2762_v35  ;;  %v3235_v41 = vld [vmem:[#allocation2 + $0x50] sm:$0xff]  ;;  %v300_v54 = vld [vmem:[#allocation2 + $0x82] sm:$0xff] }
  0x90   :  { %v117_v20 = vpop.permute.xlu1 %116  ;;  %2690 = vmatprep.subr.msk.mxu0 %vm1059_vm3, %v1009_v36  ;;  %v238_v51 = vld [vmem:[#allocation2 + $0xb1] sm:$0xff]  ;;  %v213_v16 = vld [vmem:[#allocation2] sm:$0xff] }
  0x91   :  { %v151_v22 = vmax.f32 %v3084_v44, %v117_v20  ;;  %632 = vrot.lane.b32.xlu0 %v294_v21, %s2816_s24  ;;  %209 = vst.msk [vmem:[#allocation2 + $0xf1] sm:$0xff] %vm154_vm0, %v150_v19  ;;  %v236_v44 = vld [vmem:[#allocation2 + $0x71] sm:$0xff] }
  0x92   :  { %630 = vrot.lane.b32.xlu1 %v246_v5, %s2816_s24  ;;  %v119_v24 = vpop.permute.xlu0 %118  ;;  %v254_v58 = vld [vmem:[#allocation2 + $0xb2] sm:$0xff]  ;;  %v3292_v2 = vld [vmem:[#allocation2 + $0xc0] sm:$0xff] }
  0x93   :  { %210 = vst.msk [vmem:[#allocation2 + $0x101] sm:$0xff] %vm154_vm0, %v151_v22  ;;  %v152_v25 = vmax.f32 %v3094_v47, %v119_v24  ;;  %2691 = vmatpush3.msk.msra.mxu0 %vm1059_vm3, %v1009_v36  ;;  %v3259_v47 = vld [vmem:[#allocation2 + $0x70] sm:$0xff]  ;;  %v239_v10 = vld [vmem:[#allocation2 + $0xc1] sm:$0xff] }
  0x94   :  { %v121_v26 = vpop.permute.xlu1 %120  ;;  %v3290_v1 = vld [vmem:[#allocation2 + $0xb0] sm:$0xff]  ;;  %v302_v20 = vld [vmem:[#allocation2 + $0xc2] sm:$0xff] }
  0x95   :  { %v153_v27 = vmax.f32 %v3098_v48, %v121_v26  ;;  %444 = vrot.lane.b32.xlu0 %v248_v23, %s2813_s0  ;;  %211 = vst.msk [vmem:[#allocation2 + $0x111] sm:$0xff] %vm154_vm0, %v152_v25  ;;  %v268_v48 = vld [vmem:[#allocation2 + $0x80] sm:$0xff]  ;;  %v240_v15 = vld [vmem:[#allocation2 + $0xd1] sm:$0xff] }
  0x96   :  { %442 = vrot.lane.b32.xlu1 %v294_v21, %s2813_s0  ;;  %v375_v50 = vpop.permute.xlu0 %374  ;;  %v349_v17 = vld [vmem:[#allocation2 + $0x92] sm:$0xff] }
  0x97   :  { %212 = vst.msk [vmem:[#allocation2 + $0x121] sm:$0xff] %vm154_vm0, %v153_v27  ;;  %v256_v25 = vld [vmem:[#allocation2 + $0xd2] sm:$0xff] }
  0x98   :  { %v3328_v31 = vld [vmem:[#allocation2 + $0xd0] sm:$0xff] }
  0x99   :  { %696 = vrot.lane.b32.xlu0 %v3196_v28, %s2817_s29 }
  0x9a   :  { %694 = vrot.lane.b32.xlu1 %v3168_v8, %s2817_s29  ;;  %v439_v53 = vpop.permute.xlu0 %438 }
  0x9d   :  { %508 = vrot.lane.b32.xlu0 %v3208_v32, %s2814_s17 }
  0x9e   :  { %506 = vrot.lane.b32.xlu1 %v3196_v28, %s2814_s17 }
  0xa1   :  { %760 = vrot.lane.b32.xlu0 %v232_v13, %s2818_s11 }
  0xa2   :  { %758 = vrot.lane.b32.xlu1 %v278_v7, %s2818_s11 }
  0xa5   :  { %382 = vrot.lane.b32.xlu0 %v233_v37, %s2812_s22 }
  0xa6   :  { %570 = vrot.lane.b32.xlu1 %v232_v13, %s2815_s23 }
  0xa9   :  { %634 = vrot.lane.b32.xlu0 %v248_v23, %s2816_s24 }
  0xaa   :  { %822 = vrot.lane.b32.xlu1 %v294_v21, %s2819_s14  ;;  %v870_v21 = vsel %vm154_vm0, %v213_v16, %v375_v50 }
  0xab   :  { %v887_v24 = vsel %vm886_vm2, %v870_v21, %v439_v53 }
  0xad   :  { %384 = vrot.lane.b32.xlu0 %v234_v38, %s2812_s22 }
  0xae   :  { %572 = vrot.lane.b32.xlu1 %v233_v37, %s2815_s23 }
  0xb1   :  { %636 = vrot.lane.b32.xlu0 %v296_v39, %s2816_s24 }
  0xb2   :  { %824 = vrot.lane.b32.xlu1 %v248_v23, %s2819_s14 }
  0xb5   :  { %448 = vrot.lane.b32.xlu0 %v250_v40, %s2813_s0 }
  0xb6   :  { %446 = vrot.lane.b32.xlu1 %v296_v39, %s2813_s0 }
  0xb9   :  { %700 = vrot.lane.b32.xlu0 %v3235_v41, %s2817_s29 }
  0xba   :  { %698 = vrot.lane.b32.xlu1 %v3208_v32, %s2817_s29 }
  0xbd   :  { %512 = vrot.lane.b32.xlu0 %v3241_v42, %s2814_s17 }
  0xbe   :  { %510 = vrot.lane.b32.xlu1 %v3235_v41, %s2814_s17 }
  0xc1   :  { %764 = vrot.lane.b32.xlu0 %v234_v38, %s2818_s11 }
  0xc2   :  { %762 = vrot.lane.b32.xlu1 %v233_v37, %s2818_s11 }
  0xc5   :  { %386 = vrot.lane.b32.xlu0 %v235_v43, %s2812_s22 }
  0xc6   :  { %574 = vrot.lane.b32.xlu1 %v234_v38, %s2815_s23 }
  0xc9   :  { %638 = vrot.lane.b32.xlu0 %v250_v40, %s2816_s24 }
  0xca   :  { %826 = vrot.lane.b32.xlu1 %v296_v39, %s2819_s14 }
  0xcd   :  { %388 = vrot.lane.b32.xlu0 %v236_v44, %s2812_s22 }
  0xce   :  { %576 = vrot.lane.b32.xlu1 %v235_v43, %s2815_s23 }
  0xd1   :  { %640 = vrot.lane.b32.xlu0 %v298_v45, %s2816_s24 }
  0xd2   :  { %828 = vrot.lane.b32.xlu1 %v250_v40, %s2819_s14  ;;  %v3342_v40 = vld [vmem:[#allocation2 + $0xe0] sm:$0xff] }
  0xd5   :  { %452 = vrot.lane.b32.xlu0 %v252_v46, %s2813_s0 }
  0xd6   :  { %450 = vrot.lane.b32.xlu1 %v298_v45, %s2813_s0 }
  0xd9   :  { %704 = vrot.lane.b32.xlu0 %v3259_v47, %s2817_s29 }
  0xda   :  { %702 = vrot.lane.b32.xlu1 %v3241_v42, %s2817_s29 }
  0xdd   :  { %516 = vrot.lane.b32.xlu0 %v268_v48, %s2814_s17 }
  0xde   :  { %514 = vrot.lane.b32.xlu1 %v3259_v47, %s2814_s17 }
  0xe1   :  { %768 = vrot.lane.b32.xlu0 %v236_v44, %s2818_s11 }
  0xe2   :  { %766 = vrot.lane.b32.xlu1 %v235_v43, %s2818_s11 }
  0xe5   :  { %390 = vrot.lane.b32.xlu0 %v237_v49, %s2812_s22 }
  0xe6   :  { %578 = vrot.lane.b32.xlu1 %v236_v44, %s2815_s23 }
  0xe9   :  { %642 = vrot.lane.b32.xlu0 %v252_v46, %s2816_s24 }
  0xea   :  { %830 = vrot.lane.b32.xlu1 %v298_v45, %s2819_s14 }
  0xed   :  { %392 = vrot.lane.b32.xlu0 %v238_v51, %s2812_s22 }
  0xee   :  { %580 = vrot.lane.b32.xlu1 %v284_v52, %s2815_s23 }
  0xf1   :  { %644 = vrot.lane.b32.xlu0 %v300_v54, %s2816_s24 }
  0xf2   :  { %832 = vrot.lane.b32.xlu1 %v252_v46, %s2819_s14 }
  0xf3   :  { %v503_v57 = vpop.permute.xlu0 %502 }
  0xf4   :  { %v3278_v56 = vpop.permute.xlu1 %376  ;;  %v904_v26 = vsel %vm903_vm4, %v887_v24, %v503_v57 }
  0xf5   :  { %456 = vrot.lane.b32.xlu0 %v254_v58, %s2813_s0  ;;  %v871_v35 = vsel %vm154_vm0, %v3155_v62, %v3278_v56 }
  0xf6   :  { %454 = vrot.lane.b32.xlu1 %v253_v55, %s2813_s0 }
  0xf7   :  { %v567_v61 = vpop.permute.xlu0 %566 }
  0xf8   :  { %v3282_v60 = vpop.permute.xlu1 %440  ;;  %v921_v30 = vsel %vm920_vm5, %v904_v26, %v567_v61 }
  0xf9   :  { %708 = vrot.lane.b32.xlu0 %v317_v59, %s2817_s29  ;;  %v888_v39 = vsel %vm886_vm2, %v871_v35, %v3282_v60  ;;  %v242_v59 = vld [vmem:[#allocation2 + $0xf1] sm:$0xff] }
  0xfa   :  { %706 = vrot.lane.b32.xlu1 %v268_v48, %s2817_s29 }
  0xfb   :  { %v3288_v0 = vpop.permute.xlu0 %568 }
  0xfc   :  { %v3286_v63 = vpop.permute.xlu1 %504 }
  0xfd   :  { %520 = vrot.lane.b32.xlu0 %v3292_v2, %s2814_s17  ;;  %v905_v44 = vsel %vm903_vm4, %v888_v39, %v3286_v63  ;;  %v304_v63 = vld [vmem:[#allocation2 + $0xe2] sm:$0xff] }
  0xfe   :  { %518 = vrot.lane.b32.xlu1 %v3290_v1, %s2814_s17  ;;  %v922_v46 = vsel %vm920_vm5, %v905_v44, %v3288_v0 }
  0xff   :  { %v3300_v6 = vpop.permute.xlu0 %380 }
 0x100   :  { %v3298_v5 = vpop.permute.xlu1 %378 }
 0x101   :  { %772 = vrot.lane.b32.xlu0 %v333_v4, %s2818_s11 }
 0x102   :  { %770 = vrot.lane.b32.xlu1 %v284_v52, %s2818_s11 }
 0x103   :  { %v633_v9 = vpop.permute.xlu0 %632 }
 0x104   :  { %v631_v7 = vpop.permute.xlu1 %630  ;;  %v939_v48 = vsel %vm937_vm6, %v922_v46, %v633_v9  ;;  %v872_v9 = vsel %vm154_vm0, %v3168_v8, %v3298_v5  ;;  %v306_v46 = vld [vmem:[#allocation2 + $0x102] sm:$0xff] }
 0x105   :  { %394 = vrot.lane.b32.xlu0 %v239_v10, %s2812_s22  ;;  %v938_v33 = vsel %vm937_vm6, %v921_v30, %v631_v7  ;;  %v258_v7 = vld [vmem:[#allocation2 + $0xf2] sm:$0xff] }
 0x106   :  { %582 = vrot.lane.b32.xlu1 %v238_v51, %s2815_s23 }
 0x107   :  { %v3308_v12 = vpop.permute.xlu0 %444 }
 0x108   :  { %v3306_v11 = vpop.permute.xlu1 %442 }
 0x109   :  { %646 = vrot.lane.b32.xlu0 %v254_v58, %s2816_s24 }
 0x10a   :  { %834 = vrot.lane.b32.xlu1 %v300_v54, %s2819_s14  ;;  %v241_v54 = vld [vmem:[#allocation2 + $0xe1] sm:$0xff] }
 0x10b   :  { %v697_v14 = vpop.permute.xlu0 %696 }
 0x10c   :  { %v695_v13 = vpop.permute.xlu1 %694  ;;  %v956_v49 = vsel %vm954_vm7, %v939_v48, %v697_v14 }
 0x10d   :  { %396 = vrot.lane.b32.xlu0 %v240_v15, %s2812_s22  ;;  %v955_v34 = vsel %vm954_vm7, %v938_v33, %v695_v13 }
 0x10e   :  { %584 = vrot.lane.b32.xlu1 %v239_v10, %s2815_s23 }
 0x10f   :  { %v3316_v19 = vpop.permute.xlu0 %508 }
 0x110   :  { %v3314_v18 = vpop.permute.xlu1 %506 }
 0x111   :  { %648 = vrot.lane.b32.xlu0 %v302_v20, %s2816_s24 }
 0x112   :  { %836 = vrot.lane.b32.xlu1 %v349_v17, %s2819_s14  ;;  %v3391_v17 = vld [vmem:[#allocation2 + $0xf0] sm:$0xff] }
 0x113   :  { %v761_v23 = vpop.permute.xlu0 %760 }
 0x114   :  { %v759_v22 = vpop.permute.xlu1 %758  ;;  %v973_v50 = vsel %vm971_vm8, %v956_v49, %v761_v23  ;;  %v873_v23 = vsel %vm154_vm0, %v3196_v28, %v3300_v6 }
 0x115   :  { %460 = vrot.lane.b32.xlu0 %v256_v25, %s2813_s0  ;;  %v972_v36 = vsel %vm971_vm8, %v955_v34, %v759_v22  ;;  %v3401_v22 = vld [vmem:[#allocation2 + $0x100] sm:$0xff]  ;;  %v890_v24 = vsel %vm886_vm2, %v873_v23, %v3308_v12 }
 0x116   :  { %458 = vrot.lane.b32.xlu1 %v302_v20, %s2813_s0 }
 0x117   :  { %v3325_v29 = vpop.permute.xlu0 %382 }
 0x118   :  { %v571_v27 = vpop.permute.xlu1 %570 }
 0x119   :  { %712 = vrot.lane.b32.xlu0 %v3328_v31, %s2817_s29 }
 0x11a   :  { %710 = vrot.lane.b32.xlu1 %v3292_v2, %s2817_s29 }
 0x11b   :  { %v635_v38 = vpop.permute.xlu0 %634 }
 0x11c   :  { %v823_v37 = vpop.permute.xlu1 %822 }
 0x11d   :  { %v989_v43 = vsel %vm988_vm9, %v972_v36, %v823_v37  ;;  %524 = vrot.lane.b32.xlu0 %v3342_v40, %s2814_s17 }
 0x11e   :  { %522 = vrot.lane.b32.xlu1 %v3328_v31, %s2814_s17  ;;  %2692 = vmatprep.mubr.msk.f32.mxu0 %vm1010_vm10, %v989_v43  ;;  %v244_v43 = vld [vmem:[#allocation2 + $0x111] sm:$0xff] }
 0x11f   :  { %v3352_v45 = vpop.permute.xlu0 %384 }
 0x120   :  { %v573_v62 = vpop.permute.xlu1 %572 }
 0x121   :  { %776 = vrot.lane.b32.xlu0 %v240_v15, %s2818_s11 }
 0x122   :  { %774 = vrot.lane.b32.xlu1 %v239_v10, %s2818_s11  ;;  %v889_v10 = vsel %vm886_vm2, %v872_v9, %v3306_v11 }
 0x123   :  { %v637_v52 = vpop.permute.xlu0 %636  ;;  %v906_v13 = vsel %vm903_vm4, %v889_v10, %v3314_v18 }
 0x124   :  { %v825_v51 = vpop.permute.xlu1 %824  ;;  %v923_v16 = vsel %vm920_vm5, %v906_v13, %v571_v27 }
 0x125   :  { %v990_v53 = vsel %vm988_vm9, %v973_v50, %v825_v51  ;;  %398 = vrot.lane.b32.xlu0 %v241_v54, %s2812_s22  ;;  %v260_v50 = vld [vmem:[#allocation2 + $0x112] sm:$0xff]  ;;  %v874_v51 = vsel %vm154_vm0, %v3208_v32, %v3325_v29 }
 0x126   :  { %586 = vrot.lane.b32.xlu1 %v240_v15, %s2815_s23  ;;  %2693 = vmatmul.mubr.msk.f32.vlgmr.msra.gmra.mrb[0].mxu0 %vm1010_vm10, %v990_v53 }
 0x127   :  { %v3367_v56 = vpop.permute.xlu0 %448 }
 0x128   :  { %v3365_v55 = vpop.permute.xlu1 %446 }
 0x129   :  { %650 = vrot.lane.b32.xlu0 %v256_v25, %s2816_s24 }
 0x12a   :  { %838 = vrot.lane.b32.xlu1 %v302_v20, %s2819_s14  ;;  %v940_v20 = vsel %vm937_vm6, %v923_v16, %v635_v38 }
 0x12b   :  { %v701_v58 = vpop.permute.xlu0 %700 }
 0x12c   :  { %v699_v57 = vpop.permute.xlu1 %698 }
 0x12d   :  { %400 = vrot.lane.b32.xlu0 %v242_v59, %s2812_s22  ;;  %v957_v8 = vsel %vm954_vm7, %v940_v20, %v699_v57 }
 0x12e   :  { %588 = vrot.lane.b32.xlu1 %v241_v54, %s2815_s23 }
 0x12f   :  { %v3375_v61 = vpop.permute.xlu0 %512 }
 0x130   :  { %v3373_v60 = vpop.permute.xlu1 %510 }
 0x131   :  { %652 = vrot.lane.b32.xlu0 %v304_v63, %s2816_s24 }
 0x132   :  { %840 = vrot.lane.b32.xlu1 %v256_v25, %s2819_s14  ;;  %v907_v25 = vsel %vm903_vm4, %v890_v24, %v3316_v19  ;;  %v243_v19 = vld [vmem:[#allocation2 + $0x101] sm:$0xff] }
 0x133   :  { %v765_v4 = vpop.permute.xlu0 %764  ;;  %v924_v30 = vsel %vm920_vm5, %v907_v25, %v573_v62 }
 0x134   :  { %v763_v0 = vpop.permute.xlu1 %762  ;;  %v941_v28 = vsel %vm937_vm6, %v924_v30, %v637_v52  ;;  %v891_v52 = vsel %vm886_vm2, %v874_v51, %v3365_v55  ;;  %v325_v30 = vld [vmem:[#allocation2 + $0x130] sm:$0xff] }
 0x135   :  { %464 = vrot.lane.b32.xlu0 %v258_v7, %s2813_s0  ;;  %v974_v5 = vsel %vm971_vm8, %v957_v8, %v763_v0  ;;  %v958_v6 = vsel %vm954_vm7, %v941_v28, %v701_v58  ;;  %v908_v53 = vsel %vm903_vm4, %v891_v52, %v3373_v60 }
 0x136   :  { %462 = vrot.lane.b32.xlu1 %v304_v63, %s2813_s0  ;;  %v975_v12 = vsel %vm971_vm8, %v958_v6, %v765_v4  ;;  %v276_v4 = vld [vmem:[#allocation2 + $0x120] sm:$0xff] }
 0x137   :  { %v3388_v15 = vpop.permute.xlu0 %386 }
 0x138   :  { %v575_v14 = vpop.permute.xlu1 %574 }
 0x139   :  { %716 = vrot.lane.b32.xlu0 %v3391_v17, %s2817_s29  ;;  %v925_v58 = vsel %vm920_vm5, %v908_v53, %v575_v14 }
 0x13a   :  { %714 = vrot.lane.b32.xlu1 %v3342_v40, %s2817_s29 }
 0x13b   :  { %v639_v18 = vpop.permute.xlu0 %638 }
 0x13c   :  { %v827_v11 = vpop.permute.xlu1 %826 }
 0x13d   :  { %v991_v21 = vsel %vm988_vm9, %v974_v5, %v827_v11  ;;  %528 = vrot.lane.b32.xlu0 %v3401_v22, %s2814_s17 }
 0x13e   :  { %526 = vrot.lane.b32.xlu1 %v3391_v17, %s2814_s17  ;;  %2695 = vmatprep.mubr.msk.f32.mxu0 %vm1010_vm10, %v991_v21 }
 0x13f   :  { %v3415_v27 = vpop.permute.xlu0 %388 }
 0x140   :  { %v577_v26 = vpop.permute.xlu1 %576 }
 0x141   :  { %780 = vrot.lane.b32.xlu0 %v242_v59, %s2818_s11 }
 0x142   :  { %778 = vrot.lane.b32.xlu1 %v241_v54, %s2818_s11 }
 0x143   :  { %v641_v34 = vpop.permute.xlu0 %640 }
 0x144   :  { %v829_v33 = vpop.permute.xlu1 %828 }
 0x145   :  { %v992_v35 = vsel %vm988_vm9, %v975_v12, %v829_v33  ;;  %402 = vrot.lane.b32.xlu0 %v243_v19, %s2812_s22  ;;  %v876_v12 = vsel %vm154_vm0, %v3241_v42, %v3388_v15  ;;  %v357_v15 = vld [vmem:[#allocation2 + $0x132] sm:$0xff] }
 0x146   :  { %590 = vrot.lane.b32.xlu1 %v242_v59, %s2815_s23  ;;  %2696 = vmatmul.mubr.msk.f32.gmra.mrb[2].mxu0 %vm1010_vm10, %v992_v35  ;;  %v3453_v59 = vld [vmem:[#allocation2 + $0x110] sm:$0xff] }
 0x147   :  { %v3429_v37 = vpop.permute.xlu0 %452 }
 0x148   :  { %v3427_v36 = vpop.permute.xlu1 %450 }
 0x149   :  { %654 = vrot.lane.b32.xlu0 %v258_v7, %s2816_s24  ;;  %v893_v33 = vsel %vm886_vm2, %v876_v12, %v3427_v36 }
 0x14a   :  { %842 = vrot.lane.b32.xlu1 %v304_v63, %s2819_s14  ;;  %v942_v63 = vsel %vm937_vm6, %v925_v58, %v639_v18 }
 0x14b   :  { %v705_v39 = vpop.permute.xlu0 %704 }
 0x14c   :  { %v703_v38 = vpop.permute.xlu1 %702 }
 0x14d   :  { %404 = vrot.lane.b32.xlu0 %v244_v43, %s2812_s22  ;;  %v959_v32 = vsel %vm954_vm7, %v942_v63, %v703_v38 }
 0x14e   :  { %592 = vrot.lane.b32.xlu1 %v243_v19, %s2815_s23 }
 0x14f   :  { %v3437_v62 = vpop.permute.xlu0 %516 }
 0x150   :  { %v3435_v44 = vpop.permute.xlu1 %514 }
 0x151   :  { %656 = vrot.lane.b32.xlu0 %v306_v46, %s2816_s24  ;;  %v910_v35 = vsel %vm903_vm4, %v893_v33, %v3435_v44  ;;  %v877_v44 = vsel %vm154_vm0, %v3259_v47, %v3415_v27 }
 0x152   :  { %844 = vrot.lane.b32.xlu1 %v258_v7, %s2819_s14  ;;  %v875_v7 = vsel %vm154_vm0, %v3235_v41, %v3352_v45 }
 0x153   :  { %v769_v49 = vpop.permute.xlu0 %768  ;;  %v892_v9 = vsel %vm886_vm2, %v875_v7, %v3367_v56  ;;  %v221_v7 = vld [vmem:[#allocation2 + $0xa0] sm:$0xff] }
 0x154   :  { %v767_v48 = vpop.permute.xlu1 %766  ;;  %v909_v10 = vsel %vm903_vm4, %v892_v9, %v3375_v61  ;;  %v292_v61 = vld [vmem:[#allocation2 + $0x121] sm:$0xff] }
 0x155   :  { %468 = vrot.lane.b32.xlu0 %v260_v50, %s2813_s0  ;;  %v976_v29 = vsel %vm971_vm8, %v959_v32, %v767_v48  ;;  %v926_v16 = vsel %vm920_vm5, %v909_v10, %v577_v26  ;;  %v308_v26 = vld [vmem:[#allocation2 + $0x122] sm:$0xff] }
 0x156   :  { %466 = vrot.lane.b32.xlu1 %v306_v46, %s2813_s0  ;;  %v943_v41 = vsel %vm937_vm6, %v926_v16, %v641_v34  ;;  %v341_v34 = vld [vmem:[#allocation2 + $0x131] sm:$0xff] }
 0x157   :  { %v3450_v57 = vpop.permute.xlu0 %390  ;;  %v960_v45 = vsel %vm954_vm7, %v943_v41, %v705_v39 }
 0x158   :  { %v579_v54 = vpop.permute.xlu1 %578  ;;  %v977_v56 = vsel %vm971_vm8, %v960_v45, %v769_v49 }
 0x159   :  { %720 = vrot.lane.b32.xlu0 %v3453_v59, %s2817_s29  ;;  %v927_v39 = vsel %vm920_vm5, %v910_v35, %v579_v54 }
 0x15a   :  { %718 = vrot.lane.b32.xlu1 %v3401_v22, %s2817_s29 }
 0x15b   :  { %v643_v60 = vpop.permute.xlu0 %642 }
 0x15c   :  { %v831_v55 = vpop.permute.xlu1 %830 }
 0x15d   :  { %v993_v0 = vsel %vm988_vm9, %v976_v29, %v831_v55  ;;  %532 = vrot.lane.b32.xlu0 %v276_v4, %s2814_s17 }
 0x15e   :  { %530 = vrot.lane.b32.xlu1 %v3453_v59, %s2814_s17  ;;  %2698 = vmatprep.mubr.msk.f32.mxu0 %vm1010_vm10, %v993_v0 }
 0x15f   :  { %v3474_v14 = vpop.permute.xlu0 %392 }
 0x160   :  { %v581_v13 = vpop.permute.xlu1 %580 }
 0x161   :  { %784 = vrot.lane.b32.xlu0 %v244_v43, %s2818_s11 }
 0x162   :  { %782 = vrot.lane.b32.xlu1 %v243_v19, %s2818_s11 }
 0x163   :  { %v645_v8 = vpop.permute.xlu0 %644 }
 0x164   :  { %v833_v20 = vpop.permute.xlu1 %832 }
 0x165   :  { %v994_v5 = vsel %vm988_vm9, %v977_v56, %v833_v20  ;;  %596 = vrot.lane.b32.xlu0 %v292_v61, %s2815_s23 }
 0x166   :  { %594 = vrot.lane.b32.xlu1 %v244_v43, %s2815_s23  ;;  %2699 = vmatmul.mubr.msk.f32.gmra.mrb[4].mxu0 %vm1010_vm10, %v994_v5  ;;  %v944_v43 = vsel %vm937_vm6, %v927_v39, %v643_v60 }
 0x167   :  { %v3486_v18 = vpop.permute.xlu0 %456 }
 0x168   :  { %v455_v11 = vpop.permute.xlu1 %454 }
 0x169   :  { %848 = vrot.lane.b32.xlu0 %v260_v50, %s2819_s14 }
 0x16a   :  { %846 = vrot.lane.b32.xlu1 %v306_v46, %s2819_s14 }
 0x16b   :  { %v709_v23 = vpop.permute.xlu0 %708 }
 0x16c   :  { %v707_v21 = vpop.permute.xlu1 %706 }
 0x16d   :  { %722 = vrot.lane.b32.xlu0 %v276_v4, %s2817_s29  ;;  %v961_v42 = vsel %vm954_vm7, %v944_v43, %v707_v21 }
 0x16e   :  { %658 = vrot.lane.b32.xlu1 %v260_v50, %s2816_s24  ;;  %v894_v50 = vsel %vm886_vm2, %v877_v44, %v3429_v37 }
 0x16f   :  { %v3492_v25 = vpop.permute.xlu0 %520  ;;  %v911_v51 = vsel %vm903_vm4, %v894_v50, %v3437_v62 }
 0x170   :  { %v519_v24 = vpop.permute.xlu1 %518  ;;  %v928_v54 = vsel %vm920_vm5, %v911_v51, %v581_v13  ;;  %v878_v13 = vsel %vm154_vm0, %v221_v7, %v3450_v57  ;;  %v879_v57 = vsel %vm154_vm0, %v3290_v1, %v3474_v14 }
 0x171   :  { %786 = vrot.lane.b32.xlu0 %v292_v61, %s2818_s11  ;;  %v945_v58 = vsel %vm937_vm6, %v928_v54, %v645_v8  ;;  %v895_v16 = vsel %vm886_vm2, %v878_v13, %v455_v11  ;;  %v896_v11 = vsel %vm886_vm2, %v879_v57, %v3486_v18 }
 0x172   :  { %660 = vrot.lane.b32.xlu1 %v308_v26, %s2816_s24  ;;  %v962_v63 = vsel %vm954_vm7, %v945_v58, %v709_v23  ;;  %v912_v41 = vsel %vm903_vm4, %v895_v16, %v519_v24  ;;  %v913_v24 = vsel %vm903_vm4, %v896_v11, %v3492_v25 }
 0x173   :  { %v773_v6 = vpop.permute.xlu0 %772 }
 0x174   :  { %v771_v28 = vpop.permute.xlu1 %770  ;;  %v979_v47 = vsel %vm971_vm8, %v962_v63, %v773_v6 }
 0x175   :  { %850 = vrot.lane.b32.xlu0 %v308_v26, %s2819_s14  ;;  %v978_v46 = vsel %vm971_vm8, %v961_v42, %v771_v28 }
 0x176   :  { %724 = vrot.lane.b32.xlu1 %v325_v30, %s2817_s29 }
 0x177   :  { %v3505_v38 = vpop.permute.xlu0 %394 }
 0x178   :  { %v583_v19 = vpop.permute.xlu1 %582 }
 0x179   :  { %v929_v20 = vsel %vm920_vm5, %v912_v41, %v583_v19 }
 0x17a   :  { %788 = vrot.lane.b32.xlu1 %v341_v34, %s2818_s11 }
 0x17b   :  { %v647_v36 = vpop.permute.xlu0 %646 }
 0x17c   :  { %v835_v48 = vpop.permute.xlu1 %834  ;;  %v946_v8 = vsel %vm937_vm6, %v929_v20, %v647_v36 }
 0x17d   :  { %v995_v49 = vsel %vm988_vm9, %v978_v46, %v835_v48  ;;  %v880_v48 = vsel %vm154_vm0, %v3292_v2, %v3505_v38 }
 0x17e   :  { %852 = vrot.lane.b32.xlu1 %v357_v15, %s2819_s14  ;;  %2701 = vmatprep.mubr.msk.f32.mxu0 %vm1010_vm10, %v995_v49 }
 0x17f   :  { %v3522_v53 = vpop.permute.xlu0 %396 }
 0x180   :  { %v585_v52 = vpop.permute.xlu1 %584  ;;  %v881_v2 = vsel %vm154_vm0, %v3328_v31, %v3522_v53 }
 0x181   :  { %v930_v6 = vsel %vm920_vm5, %v913_v24, %v585_v52 }
 0x183   :  { %v649_v32 = vpop.permute.xlu0 %648 }
 0x184   :  { %v837_v27 = vpop.permute.xlu1 %836  ;;  %v947_v12 = vsel %vm937_vm6, %v930_v6, %v649_v32 }
 0x185   :  { %v996_v29 = vsel %vm988_vm9, %v979_v47, %v837_v27 }
 0x186   :  { %2702 = vmatmul.mubr.msk.f32.gmra.mrb[6].mxu0 %vm1010_vm10, %v996_v29 }
 0x187   :  { %v461_v55 = vpop.permute.xlu0 %460 }
 0x188   :  { %v459_v37 = vpop.permute.xlu1 %458  ;;  %v898_v38 = vsel %vm886_vm2, %v881_v2, %v461_v55 }
 0x189   :  { %v897_v36 = vsel %vm886_vm2, %v880_v48, %v459_v37 }
 0x18b   :  { %v713_v60 = vpop.permute.xlu0 %712 }
 0x18c   :  { %v711_v62 = vpop.permute.xlu1 %710  ;;  %v964_v33 = vsel %vm954_vm7, %v947_v12, %v713_v60 }
 0x18d   :  { %v963_v5 = vsel %vm954_vm7, %v946_v8, %v711_v62 }
 0x18f   :  { %v525_v4 = vpop.permute.xlu0 %524 }
 0x190   :  { %v523_v0 = vpop.permute.xlu1 %522  ;;  %v915_v32 = vsel %vm903_vm4, %v898_v38, %v525_v4 }
 0x191   :  { %v914_v49 = vsel %vm903_vm4, %v897_v36, %v523_v0 }
 0x193   :  { %v777_v10 = vpop.permute.xlu0 %776 }
 0x194   :  { %v775_v9 = vpop.permute.xlu1 %774  ;;  %v981_v34 = vsel %vm971_vm8, %v964_v33, %v777_v10 }
 0x195   :  { %v980_v61 = vsel %vm971_vm8, %v963_v5, %v775_v9 }
 0x197   :  { %v3534_v56 = vpop.permute.xlu0 %398 }
 0x198   :  { %v587_v45 = vpop.permute.xlu1 %586  ;;  %v882_v8 = vsel %vm154_vm0, %v3342_v40, %v3534_v56 }
 0x199   :  { %v931_v51 = vsel %vm920_vm5, %v914_v49, %v587_v45 }
 0x19b   :  { %v651_v23 = vpop.permute.xlu0 %650 }
 0x19c   :  { %v839_v21 = vpop.permute.xlu1 %838  ;;  %v948_v52 = vsel %vm937_vm6, %v931_v51, %v651_v23 }
 0x19d   :  { %v997_v26 = vsel %vm988_vm9, %v980_v61, %v839_v21 }
 0x19e   :  { %2704 = vmatprep.mubr.msk.f32.mxu0 %vm1010_vm10, %v997_v26 }
 0x19f   :  { %v401_v28 = vpop.permute.xlu0 %400 }
 0x1a0   :  { %v589_v30 = vpop.permute.xlu1 %588  ;;  %v883_v5 = vsel %vm154_vm0, %v3391_v17, %v401_v28 }
 0x1a1   :  { %v932_v62 = vsel %vm920_vm5, %v915_v32, %v589_v30 }
 0x1a3   :  { %v653_v1 = vpop.permute.xlu0 %652 }
 0x1a4   :  { %v841_v35 = vpop.permute.xlu1 %840  ;;  %v949_v60 = vsel %vm937_vm6, %v932_v62, %v653_v1 }
 0x1a5   :  { %v998_v14 = vsel %vm988_vm9, %v981_v34, %v841_v35 }
 0x1a6   :  { %2705 = vmatmul.mubr.msk.f32.gmra.mrb[8].mxu0 %vm1010_vm10, %v998_v14 }
 0x1a7   :  { %v465_v19 = vpop.permute.xlu0 %464 }
 0x1a8   :  { %v463_v18 = vpop.permute.xlu1 %462  ;;  %v900_v21 = vsel %vm886_vm2, %v883_v5, %v465_v19 }
 0x1a9   :  { %v899_v61 = vsel %vm886_vm2, %v882_v8, %v463_v18 }
 0x1ab   :  { %v717_v25 = vpop.permute.xlu0 %716 }
 0x1ac   :  { %v715_v39 = vpop.permute.xlu1 %714  ;;  %v966_v0 = vsel %vm954_vm7, %v949_v60, %v717_v25 }
 0x1ad   :  { %v965_v54 = vsel %vm954_vm7, %v948_v52, %v715_v39 }
 0x1af   :  { %v529_v42 = vpop.permute.xlu0 %528 }
 0x1b0   :  { %v527_v43 = vpop.permute.xlu1 %526  ;;  %v917_v26 = vsel %vm903_vm4, %v900_v21, %v529_v42 }
 0x1b1   :  { %v916_v23 = vsel %vm903_vm4, %v899_v61, %v527_v43 }
 0x1b3   :  { %v781_v46 = vpop.permute.xlu0 %780 }
 0x1b4   :  { %v779_v15 = vpop.permute.xlu1 %778  ;;  %v983_v7 = vsel %vm971_vm8, %v966_v0, %v781_v46 }
 0x1b5   :  { %v982_v58 = vsel %vm971_vm8, %v965_v54, %v779_v15 }
 0x1b7   :  { %v403_v50 = vpop.permute.xlu0 %402 }
 0x1b8   :  { %v591_v44 = vpop.permute.xlu1 %590  ;;  %v884_v14 = vsel %vm154_vm0, %v3401_v22, %v403_v50 }
 0x1b9   :  { %v933_v24 = vsel %vm920_vm5, %v916_v23, %v591_v44 }
 0x1bb   :  { %v655_v47 = vpop.permute.xlu0 %654 }
 0x1bc   :  { %v843_v63 = vpop.permute.xlu1 %842  ;;  %v950_v6 = vsel %vm937_vm6, %v933_v24, %v655_v47 }
 0x1bd   :  { %v999_v27 = vsel %vm988_vm9, %v982_v58, %v843_v63 }
 0x1be   :  { %2707 = vmatprep.mubr.msk.f32.mxu0 %vm1010_vm10, %v999_v27 }
 0x1bf   :  { %v405_v37 = vpop.permute.xlu0 %404 }
 0x1c0   :  { %v593_v29 = vpop.permute.xlu1 %592  ;;  %v885_v50 = vsel %vm154_vm0, %v3453_v59, %v405_v37  ;;  %vm2227_vm0 = vcmask 588800  }
 0x1c1   :  { %v934_v30 = vsel %vm920_vm5, %v917_v26, %v593_v29 }
 0x1c3   :  { %v657_v10 = vpop.permute.xlu0 %656 }
 0x1c4   :  { %v845_v9 = vpop.permute.xlu1 %844  ;;  %v951_v40 = vsel %vm937_vm6, %v934_v30, %v657_v10 }
 0x1c5   :  { %v1000_v31 = vsel %vm988_vm9, %v983_v7, %v845_v9 }
 0x1c6   :  { %2708 = vmatmul.mubr.msk.f32.gmra.mrb[10].mxu0 %vm1010_vm10, %v1000_v31 }
 0x1c7   :  { %v469_v55 = vpop.permute.xlu0 %468 }
 0x1c8   :  { %v467_v53 = vpop.permute.xlu1 %466  ;;  %v902_v51 = vsel %vm886_vm2, %v885_v50, %v469_v55 }
 0x1c9   :  { %v901_v39 = vsel %vm886_vm2, %v884_v14, %v467_v53 }
 0x1cb   :  { %v721_v4 = vpop.permute.xlu0 %720 }
 0x1cc   :  { %v719_v13 = vpop.permute.xlu1 %718  ;;  %v968_v56 = vsel %vm954_vm7, %v951_v40, %v721_v4 }
 0x1cd   :  { %v967_v17 = vsel %vm954_vm7, %v950_v6, %v719_v13 }
 0x1cf   :  { %v533_v41 = vpop.permute.xlu0 %532 }
 0x1d0   :  { %v531_v16 = vpop.permute.xlu1 %530  ;;  %v919_v52 = vsel %vm903_vm4, %v902_v51, %v533_v41 }
 0x1d1   :  { %v918_v25 = vsel %vm903_vm4, %v901_v39, %v531_v16 }
 0x1d3   :  { %v785_v20 = vpop.permute.xlu0 %784 }
 0x1d4   :  { %v783_v45 = vpop.permute.xlu1 %782  ;;  %v985_v12 = vsel %vm971_vm8, %v968_v56, %v785_v20 }
 0x1d5   :  { %v984_v28 = vsel %vm971_vm8, %v967_v17, %v783_v45 }
 0x1d7   :  { %v597_v11 = vpop.permute.xlu0 %596 }
 0x1d8   :  { %v595_v57 = vpop.permute.xlu1 %594  ;;  %v936_v58 = vsel %vm920_vm5, %v919_v52, %v597_v11 }
 0x1d9   :  { %v935_v43 = vsel %vm920_vm5, %v918_v25, %v595_v57 }
 0x1db   :  { %v849_v34 = vpop.permute.xlu0 %848 }
 0x1dc   :  { %v847_v33 = vpop.permute.xlu1 %846  ;;  %v1002_v1 = vsel %vm988_vm9, %v985_v12, %v849_v34 }
 0x1dd   :  { %v1001_v35 = vsel %vm988_vm9, %v984_v28, %v847_v33 }
 0x1de   :  { %2710 = vmatprep.mubr.msk.f32.mxu0 %vm1010_vm10, %v1001_v35 }
 0x1df   :  { %2711 = vmatmul.mubr.msk.f32.gmra.mrb[12].mxu0 %vm1010_vm10, %v1002_v1  ;;  %v723_v19 = vpop.permute.xlu0 %722 }
 0x1e0   :  { %v659_v18 = vpop.permute.xlu1 %658 }
 0x1e1   :  { %v952_v42 = vsel %vm937_vm6, %v935_v43, %v659_v18 }
 0x1e2   :  { %v969_v48 = vsel %vm954_vm7, %v952_v42, %v723_v19 }
 0x1e3   :  { %v787_v46 = vpop.permute.xlu0 %786 }
 0x1e4   :  { %v661_v15 = vpop.permute.xlu1 %660  ;;  %v986_v36 = vsel %vm971_vm8, %v969_v48, %v787_v46  ;;  %v1461_v46 = vld [vmem:[#allocation3 + $0x2] sm:$0xff] }
 0x1e5   :  { %v953_v63 = vsel %vm937_vm6, %v936_v58, %v661_v15  ;;  %v1445_v15 = vld [vmem:[#allocation3 + $0x1] sm:$0xff]  ;;  %v1557_v58 = vld [vmem:[#allocation3 + $0x131] sm:$0xff] }
 0x1e6   :  { %1590 = vrot.lane.b32.xlu0 %v1445_v15, %s2813_s0  ;;  %v1453_v48 = vld [vmem:[#allocation3 + $0xa1] sm:$0xff] }
 0x1e7   :  { %v851_v44 = vpop.permute.xlu0 %850 }
 0x1e8   :  { %v725_v49 = vpop.permute.xlu1 %724  ;;  %v1003_v22 = vsel %vm988_vm9, %v986_v36, %v851_v44  ;;  %v1469_v36 = vld [vmem:[#allocation3 + $0xa2] sm:$0xff] }
 0x1e9   :  { %2713 = vmatprep.mubr.msk.f32.mxu0 %vm1010_vm10, %v1003_v22  ;;  %v970_v47 = vsel %vm954_vm7, %v953_v63, %v725_v49  ;;  %1670 = vrot.lane.b32.xlu1 %v1469_v36, %s2815_s23  ;;  %v1565_v49 = vld [vmem:[#allocation3 + $0x92] sm:$0xff] }
 0x1ea   :  { %1654 = vrot.lane.b32.xlu0 %v1461_v46, %s2815_s23  ;;  %v1541_v22 = vld [vmem:[#allocation3 + $0x130] sm:$0xff] }
 0x1eb   :  { %v1549_v63 = vld [vmem:[#allocation3 + $0x91] sm:$0xff] }
 0x1ec   :  { %v789_v54 = vpop.permute.xlu1 %788 }
 0x1ed   :  { %v987_v27 = vsel %vm971_vm8, %v970_v47, %v789_v54  ;;  %2052 = vrot.lane.b32.xlu1 %v1565_v49, %s2820_s1 }
 0x1ee   :  { %1606 = vrot.lane.b32.xlu0 %v1453_v48, %s2813_s0 }
 0x1f0   :  { %v853_v2 = vpop.permute.xlu1 %852 }
 0x1f1   :  { %v1004_v38 = vsel %vm988_vm9, %v987_v27, %v853_v2  ;;  %1940 = vrot.lane.b32.xlu1 %v1541_v22, %s2821_s15 }
 0x1f2   :  { %2714 = vmatmul.mubr.msk.f32.gmra.mrb[14].mxu0 %vm1010_vm10, %v1004_v38  ;;  %1924 = vrot.lane.b32.xlu0 %v1533_v3, %s2821_s15 }
 0x1f5   :  { %2004 = vrot.lane.b32.xlu1 %v1557_v58, %s2822_s16 }
 0x1f6   :  { %1988 = vrot.lane.b32.xlu0 %v1549_v63, %s2822_s16 }
 0x1f9   :  { %v3618_v59 = vpop.f32.mrb[0].mxu0 }
 0x1fa   :  { %v1211_v32 = vsel %vm886_vm2, %v3618_v59, 0.0  ;;  %v1250_v29 = vmul.f32 %v3618_v59, %v3618_v59  ;;  %v3624_v37 = vpop.f32.mrb[1].mxu0 }
 0x1fb   :  { %v1210_v62 = vsel %vm886_vm2, %v3624_v37, 0.0  ;;  %v1249_v60 = vmul.f32 %v3624_v37, %v3624_v37 }
 0x1fc   :  { %v1266_v0 = vsel %vm886_vm2, %v1250_v29, 0.0  ;;  %v1212_v7 = vadd.f32 %v1211_v32, %v1210_v62 }
 0x1fd   :  { %v1265_v9 = vsel %vm886_vm2, %v1249_v60, 0.0 }
 0x1fe   :  { %v1267_v10 = vadd.f32 %v1266_v0, %v1265_v9 }
 0x219   :  { %v3632_v31 = vpop.f32.mrb[2].mxu0 }
 0x21a   :  { %v3634_v53 = vpop.f32.mrb[3].mxu0  ;;  %v1252_v55 = vmul.f32 %v3632_v31, %v3632_v31  ;;  %v1215_v41 = vsel %vm886_vm2, %v3632_v31, 0.0 }
 0x21b   :  { %v1213_v13 = vsel %vm886_vm2, %v3634_v53, 0.0  ;;  %v1251_v4 = vmul.f32 %v3634_v53, %v3634_v53 }
 0x21c   :  { %v1214_v16 = vadd.f32 %v1213_v13, %v1212_v7  ;;  %v1270_v5 = vsel %vm886_vm2, %v1252_v55, 0.0 }
 0x21d   :  { %v1268_v45 = vsel %vm886_vm2, %v1251_v4, 0.0 }
 0x21e   :  { %v1269_v20 = vadd.f32 %v1268_v45, %v1267_v10  ;;  %v1216_v8 = vadd.f32 %v1215_v41, %v1214_v16 }
 0x220   :  { %v1271_v61 = vadd.f32 %v1270_v5, %v1269_v20 }
 0x239   :  { %v3646_v21 = vpop.f32.mrb[4].mxu0 }
 0x23a   :  { %v3648_v23 = vpop.f32.mrb[5].mxu0  ;;  %v1254_v26 = vmul.f32 %v3646_v21, %v3646_v21  ;;  %v1219_v30 = vsel %vm886_vm2, %v3646_v21, 0.0 }
 0x23b   :  { %v1217_v57 = vsel %vm886_vm2, %v3648_v23, 0.0  ;;  %v1253_v11 = vmul.f32 %v3648_v23, %v3648_v23 }
 0x23c   :  { %v1218_v24 = vadd.f32 %v1217_v57, %v1216_v8  ;;  %v1274_v56 = vsel %vm886_vm2, %v1254_v26, 0.0 }
 0x23d   :  { %v1272_v6 = vsel %vm886_vm2, %v1253_v11, 0.0 }
 0x23e   :  { %v1273_v40 = vadd.f32 %v1272_v6, %v1271_v61  ;;  %v1220_v17 = vadd.f32 %v1219_v30, %v1218_v24 }
 0x240   :  { %v1275_v28 = vadd.f32 %v1274_v56, %v1273_v40 }
 0x259   :  { %v3660_v12 = vpop.f32.mrb[6].mxu0 }
 0x25a   :  { %v3662_v33 = vpop.f32.mrb[7].mxu0  ;;  %v1256_v34 = vmul.f32 %v3660_v12, %v3660_v12  ;;  %v1223_v18 = vsel %vm886_vm2, %v3660_v12, 0.0 }
 0x25b   :  { %v1221_v35 = vsel %vm886_vm2, %v3662_v33, 0.0  ;;  %v1255_v1 = vmul.f32 %v3662_v33, %v3662_v33 }
 0x25c   :  { %v1222_v14 = vadd.f32 %v1221_v35, %v1220_v17  ;;  %v1278_v43 = vsel %vm886_vm2, %v1256_v34, 0.0 }
 0x25d   :  { %v1276_v19 = vsel %vm886_vm2, %v1255_v1, 0.0 }
 0x25e   :  { %v1277_v39 = vadd.f32 %v1276_v19, %v1275_v28  ;;  %v1224_v25 = vadd.f32 %v1223_v18, %v1222_v14 }
 0x260   :  { %v1279_v42 = vadd.f32 %v1278_v43, %v1277_v39 }
 0x279   :  { %v3719_v44 = vpop.f32.mrb[8].mxu0 }
 0x27a   :  { %v3721_v50 = vpop.f32.mrb[9].mxu0  ;;  %v1258_v51 = vmul.f32 %v3719_v44, %v3719_v44  ;;  %v1227_v27 = vsel %vm886_vm2, %v3719_v44, 0.0 }
 0x27b   :  { %v1225_v52 = vsel %vm886_vm2, %v3721_v50, 0.0  ;;  %v1257_v54 = vmul.f32 %v3721_v50, %v3721_v50 }
 0x27c   :  { %v1226_v47 = vadd.f32 %v1225_v52, %v1224_v25  ;;  %v1282_v29 = vsel %vm886_vm2, %v1258_v51, 0.0 }
 0x27d   :  { %v1280_v2 = vsel %vm886_vm2, %v1257_v54, 0.0 }
 0x27e   :  { %v1281_v38 = vadd.f32 %v1280_v2, %v1279_v42  ;;  %v1228_v32 = vadd.f32 %v1227_v27, %v1226_v47 }
 0x280   :  { %v1283_v62 = vadd.f32 %v1282_v29, %v1281_v38 }
 0x299   :  { %v3737_v60 = vpop.f32.mrb[10].mxu0 }
 0x29a   :  { %v3739_v0 = vpop.f32.mrb[11].mxu0  ;;  %v1260_v7 = vmul.f32 %v3737_v60, %v3737_v60  ;;  %v1231_v13 = vsel %vm886_vm2, %v3737_v60, 0.0 }
 0x29b   :  { %v1229_v9 = vsel %vm886_vm2, %v3739_v0, 0.0  ;;  %v1259_v10 = vmul.f32 %v3739_v0, %v3739_v0 }
 0x29c   :  { %v1230_v55 = vadd.f32 %v1229_v9, %v1228_v32  ;;  %v1286_v45 = vsel %vm886_vm2, %v1260_v7, 0.0  ;;  %v1312_v7 = vlaneseq }
 0x29d   :  { %v1284_v4 = vsel %vm886_vm2, %v1259_v10, 0.0  ;;  %v1208_v10 = vld [vmem:[%s4494_s3] sm:$0x1]  ;;  %s2823_s3 = smov 40  }
 0x29e   :  { %v1285_v16 = vadd.f32 %v1284_v4, %v1283_v62  ;;  %v1232_v41 = vadd.f32 %v1231_v13, %v1230_v55  ;;  %v1313_v9 = vshrl.u32 %v1312_v7, 7 }
 0x2a0   :  { %v1287_v20 = vadd.f32 %v1286_v45, %v1285_v16  ;;  %v3777_v55 = vsub.s32 0, %v1313_v9  ;;  %v1209_v16 = vld [vmem:[%s4495_s4] sm:$0x1] }
 0x2b2   :  { %v3751_v8 = vpop.f32.mrb[12].mxu0 }
 0x2b3   :  { %v3753_v5 = vpop.f32.mrb[13].mxu0  ;;  %v1262_v61 = vmul.f32 %v3751_v8, %v3751_v8  ;;  %v1235_v24 = vsel %vm886_vm2, %v3751_v8, 0.0 }
 0x2b4   :  { %v1233_v26 = vsel %vm886_vm2, %v3753_v5, 0.0  ;;  %v1261_v57 = vmul.f32 %v3753_v5, %v3753_v5 }
 0x2b5   :  { %v1234_v11 = vadd.f32 %v1233_v26, %v1232_v41  ;;  %v1290_v17 = vsel %vm886_vm2, %v1262_v61, 0.0 }
 0x2b6   :  { %v1288_v30 = vsel %vm886_vm2, %v1261_v57, 0.0 }
 0x2b7   :  { %v1289_v6 = vadd.f32 %v1288_v30, %v1287_v20  ;;  %v1236_v40 = vadd.f32 %v1235_v24, %v1234_v11 }
 0x2b9   :  { %v1291_v56 = vadd.f32 %v1290_v17, %v1289_v6 }
 0x2c5   :  { %v3765_v28 = vpop.f32.mrb[14].mxu0 }
 0x2c6   :  { %v1199_v34 = vpop.f32.mrb[15].mxu0  ;;  %v1264_v35 = vmul.f32 %v3765_v28, %v3765_v28  ;;  %v1239_v19 = vsel %vm886_vm2, %v3765_v28, 0.0 }
 0x2c7   :  { %v1237_v1 = vsel %vm886_vm2, %v1199_v34, 0.0  ;;  %v1263_v14 = vmul.f32 %v1199_v34, %v1199_v34 }
 0x2c8   :  { %v1238_v18 = vadd.f32 %v1237_v1, %v1236_v40  ;;  %v1294_v42 = vsel %vm886_vm2, %v1264_v35, 0.0 }
 0x2c9   :  { %v1292_v39 = vsel %vm886_vm2, %v1263_v14, 0.0 }
 0x2ca   :  { %v1240_v25 = vadd.f32 %v1239_v19, %v1238_v18  ;;  %v1293_v43 = vadd.f32 %v1292_v39, %v1291_v56 }
 0x2cc   :  { %v1241_v15 = vrot.slane %v1240_v25, 4  ;;  %v1295_v46 = vadd.f32 %v1294_v42, %v1293_v43 }
 0x2ce   :  { %v1242_v48 = vadd.f32 %v1241_v15, %v1240_v25  ;;  %v1296_v36 = vrot.slane %v1295_v46, 4 }
 0x2d0   :  { %v1243_v49 = vrot.slane %v1242_v48, 2  ;;  %v1297_v22 = vadd.f32 %v1296_v36, %v1295_v46 }
 0x2d2   :  { %v1244_v3 = vadd.f32 %v1243_v49, %v1242_v48  ;;  %v1298_v51 = vrot.slane %v1297_v22, 2 }
 0x2d4   :  { %v1245_v52 = vrot.slane %v1244_v3, 1  ;;  %v1299_v54 = vadd.f32 %v1298_v51, %v1297_v22 }
 0x2d6   :  { %v1246_v58 = vadd.f32 %v1245_v52, %v1244_v3  ;;  %v1300_v63 = vrot.slane %v1299_v54, 1 }
 0x2d8   :  { %v1248_v47 = vmul.f32 0.0078125, %v1246_v58  ;;  %v1301_v27 = vadd.f32 %v1300_v63, %v1299_v54 }
 0x2da   :  { %v1302_v2 = vmul.f32 0.0078125, %v1301_v27  ;;  %v1303_v38 = vmul.f32 %v1248_v47, %v1248_v47 }
 0x2dc   :  { %v1304_v32 = vsub.f32 %v1302_v2, %v1303_v38 }
 0x2de   :  { %v1305_v29 = vmax.f32 %v1304_v32, 0.0 }
 0x2e0   :  { %v1306_v62 = vadd.f32 1e-05, %v1305_v29 }
 0x2e2   :  { %2806 = vrsqrt.f32 %v1306_v62 }
 0x2ec   :  { %v2807_v13 = vpop.eup %2806 }
 0x2ed   :  { %v1308_v4 = vmul.f32 %v2807_v13, %v1208_v10 }
 0x2ef   :  { %v1309_v41 = vmul.f32 %v1308_v4, %v1248_v47  ;;  %v1315_v45 = vrot.slane %v1308_v4, %v3777_v55 }
 0x2f1   :  { %v1310_v20 = vsub.f32 %v1209_v16, %v1309_v41  ;;  %v1331_v61 = vmul.f32 %v1315_v45, %v1199_v34  ;;  %v1317_v26 = vmul.f32 %v1315_v45, %v3624_v37  ;;  %v1319_v57 = vmul.f32 %v1315_v45, %v3634_v53  ;;  %v2218_v41 = vld [vmem:[%s4496_s2] sm:$0xff] }
 0x2f2   :  { %v1318_v11 = vmul.f32 %v3618_v59, %v1315_v45  ;;  %v1320_v24 = vmul.f32 %v3632_v31, %v1315_v45  ;;  %v1321_v30 = vmul.f32 %v1315_v45, %v3648_v23  ;;  %v1322_v6 = vmul.f32 %v3646_v21, %v1315_v45 }
 0x2f3   :  { %v1337_v40 = vrot.slane %v1310_v20, %v3777_v55  ;;  %v1323_v17 = vmul.f32 %v1315_v45, %v3662_v33  ;;  %v1324_v56 = vmul.f32 %v3660_v12, %v1315_v45  ;;  %v1325_v34 = vmul.f32 %v1315_v45, %v3721_v50 }
 0x2f4   :  { %v1326_v37 = vmul.f32 %v3719_v44, %v1315_v45  ;;  %v1327_v53 = vmul.f32 %v1315_v45, %v3739_v0  ;;  %v1328_v59 = vmul.f32 %v3737_v60, %v1315_v45  ;;  %v1329_v31 = vmul.f32 %v1315_v45, %v3753_v5 }
 0x2f5   :  { %v1353_v35 = vadd.f32 %v1337_v40, %v1331_v61  ;;  %v1339_v23 = vadd.f32 %v1337_v40, %v1317_v26  ;;  %v1341_v1 = vadd.f32 %v1337_v40, %v1319_v57  ;;  %v1340_v21 = vadd.f32 %v1337_v40, %v1318_v11  ;;  %v2220_v61 = vld [vmem:[%s4496_s2 + $0x10] sm:$0xff]  ;;  %v2221_v26 = vld [vmem:[%s4496_s2 + $0x18] sm:$0xff] }
 0x2f6   :  { %v1342_v14 = vadd.f32 %v1337_v40, %v1320_v24  ;;  %v1343_v18 = vadd.f32 %v1337_v40, %v1321_v30  ;;  %v1344_v19 = vadd.f32 %v1337_v40, %v1322_v6  ;;  %v1345_v33 = vadd.f32 %v1337_v40, %v1323_v17  ;;  %v2222_v24 = vld [vmem:[%s4496_s2 + $0x20] sm:$0xff]  ;;  %v2223_v30 = vld [vmem:[%s4496_s2 + $0x28] sm:$0xff]  ;;  %v2224_v17 = vld [vmem:[%s4496_s2 + $0x30] sm:$0xff] }
 0x2f7   :  { %v1369_v39 = vmax.f32 %v1353_v35, 0.0  ;;  %v1355_v12 = vmax.f32 %v1339_v23, 0.0  ;;  %v1357_v25 = vmax.f32 %v1341_v1, 0.0  ;;  %v1356_v50 = vmax.f32 %v1340_v21, 0.0 }
 0x2f8   :  { %v1358_v43 = vmax.f32 %v1342_v14, 0.0  ;;  %v1359_v44 = vmax.f32 %v1343_v18, 0.0  ;;  %v1360_v42 = vmax.f32 %v1344_v19, 0.0  ;;  %v1361_v0 = vmax.f32 %v1345_v33, 0.0  ;;  %v3918_v14 = vpop.permute.xlu0 %1590  ;;  %v3926_v19 = vpop.permute.xlu1 %1670 }
 0x2f9   :  { %1427 = vst.msk [vmem:[#allocation3 + $0x111] sm:$0xff] %vm886_vm2, %v1369_v39  ;;  %1413 = vst.msk [vmem:[#allocation3 + $0x11] sm:$0xff] %vm886_vm2, %v1355_v12  ;;  %v1346_v60 = vadd.f32 %v1337_v40, %v1324_v56  ;;  %v1347_v5 = vadd.f32 %v1337_v40, %v1325_v34  ;;  %v1348_v15 = vadd.f32 %v1337_v40, %v1326_v37  ;;  %v2225_v56 = vld [vmem:[%s4496_s2 + $0x38] sm:$0xff]  ;;  %v2226_v37 = vld [vmem:[%s4496_s2 + $0x40] sm:$0xff] }
 0x2fa   :  { %1415 = vst.msk [vmem:[#allocation3 + $0x31] sm:$0xff] %vm886_vm2, %v1357_v25  ;;  %1414 = vst.msk [vmem:[#allocation3 + $0x21] sm:$0xff] %vm886_vm2, %v1356_v50  ;;  %v1349_v46 = vadd.f32 %v1337_v40, %v1327_v53  ;;  %v1350_v48 = vadd.f32 %v1337_v40, %v1328_v59  ;;  %v1351_v36 = vadd.f32 %v1337_v40, %v1329_v31 }
 0x2fb   :  { %1416 = vst.msk [vmem:[#allocation3 + $0x41] sm:$0xff] %vm886_vm2, %v1358_v43  ;;  %1417 = vst.msk [vmem:[#allocation3 + $0x51] sm:$0xff] %vm886_vm2, %v1359_v44  ;;  %v1330_v49 = vmul.f32 %v3751_v8, %v1315_v45  ;;  %v1332_v22 = vmul.f32 %v3765_v28, %v1315_v45  ;;  %v1362_v3 = vmax.f32 %v1346_v60, 0.0  ;;  %v1363_v51 = vmax.f32 %v1347_v5, 0.0  ;;  %v2219_v45 = vld [vmem:[%s4496_s2 + $0x8] sm:$0xff] }
 0x2fc   :  { %1418 = vst.msk [vmem:[#allocation3 + $0x61] sm:$0xff] %vm886_vm2, %v1360_v42  ;;  %1419 = vst.msk [vmem:[#allocation3 + $0x71] sm:$0xff] %vm886_vm2, %v1361_v0  ;;  %v1364_v52 = vmax.f32 %v1348_v15, 0.0  ;;  %v1365_v54 = vmax.f32 %v1349_v46, 0.0  ;;  %v1366_v58 = vmax.f32 %v1350_v48, 0.0  ;;  %v1367_v63 = vmax.f32 %v1351_v36, 0.0  ;;  %v3931_v39 = vpop.permute.xlu0 %1654  ;;  %v3935_v12 = vpop.permute.xlu1 %2052 }
 0x2fd   :  { %v1352_v47 = vadd.f32 %v1337_v40, %v1330_v49  ;;  %v1354_v27 = vadd.f32 %v1337_v40, %v1332_v22  ;;  %1420 = vst.msk [vmem:[#allocation3 + $0x81] sm:$0xff] %vm886_vm2, %v1362_v3  ;;  %1421 = vst.msk [vmem:[#allocation3 + $0xb1] sm:$0xff] %vm886_vm2, %v1363_v51  ;;  %v2766_v20 = vpack.c.bf16 %v2219_v45, %v2218_v41 }
 0x2fe   :  { %1422 = vst.msk [vmem:[#allocation3 + $0xc1] sm:$0xff] %vm886_vm2, %v1364_v52  ;;  %1423 = vst.msk [vmem:[#allocation3 + $0xd1] sm:$0xff] %vm886_vm2, %v1365_v54  ;;  %v2770_v57 = vpack.c.bf16 %v2221_v26, %v2220_v61  ;;  %v2774_v6 = vpack.c.bf16 %v2223_v30, %v2222_v24  ;;  %v2778_v34 = vpack.c.bf16 %v2225_v56, %v2224_v17 }
 0x2ff   :  { %1424 = vst.msk [vmem:[#allocation3 + $0xe1] sm:$0xff] %vm886_vm2, %v1366_v58  ;;  %1425 = vst.msk [vmem:[#allocation3 + $0xf1] sm:$0xff] %vm886_vm2, %v1367_v63  ;;  %v1368_v8 = vmax.f32 %v1352_v47, 0.0  ;;  %v1370_v28 = vmax.f32 %v1354_v27, 0.0  ;;  %2767 = vmatprep.subr.bf16.mxu0 %v2766_v20  ;;  %2782 = vmatprep.subr.bf16.mxu1 %v2766_v20 }
 0x300   :  { %v1462_v2 = vld [vmem:[#allocation3 + $0x12] sm:$0xff]  ;;  %2769 = vmatpush3.bf16.msra.mxu0 %v2766_v20  ;;  %2787 = vmatpush3.bf16.msra.mxu1 %v2766_v20  ;;  %v3937_v25 = vpop.permute.xlu0 %1606  ;;  %v3941_v50 = vpop.permute.xlu1 %1940 }
 0x301   :  { %v1446_v38 = vld [vmem:[#allocation3 + $0x11] sm:$0xff]  ;;  %1426 = vst.msk [vmem:[#allocation3 + $0x101] sm:$0xff] %vm886_vm2, %v1368_v8  ;;  %1428 = vst.msk [vmem:[#allocation3 + $0x121] sm:$0xff] %vm886_vm2, %v1370_v28  ;;  %1656 = vrot.lane.b32.xlu0 %v1462_v2, %s2815_s23  ;;  %v1447_v29 = vld [vmem:[#allocation3 + $0x21] sm:$0xff]  ;;  %2771 = vmatprep.subr.bf16.mxu0 %v2770_v57 }
 0x302   :  { %1592 = vrot.lane.b32.xlu1 %v1446_v38, %s2813_s0  ;;  %v3817_v32 = vld [vmem:[#allocation3 + $0x31] sm:$0xff]  ;;  %v3822_v62 = vld [vmem:[#allocation3 + $0x20] sm:$0xff]  ;;  %2783 = vmatprep.subr.bf16.mxu1 %v2770_v57 }
 0x303   :  { %v3824_v7 = vld [vmem:[#allocation3 + $0x10] sm:$0xff]  ;;  %v1463_v10 = vld [vmem:[#allocation3 + $0x22] sm:$0xff] }
 0x304   :  { %v3830_v9 = vld [vmem:[#allocation3 + $0x32] sm:$0xff]  ;;  %v3837_v13 = vld [vmem:[#allocation3 + $0x40] sm:$0xff]  ;;  %2773 = vmatpush3.bf16.msra.mxu0 %v2770_v57  ;;  %2788 = vmatpush3.bf16.msra.mxu1 %v2770_v57  ;;  %v3943_v43 = vpop.permute.xlu0 %1924  ;;  %v3949_v60 = vpop.permute.xlu1 %2004 }
 0x305   :  { %1596 = vrot.lane.b32.xlu0 %v3817_v32, %s2813_s0  ;;  %v3839_v4 = vld [vmem:[#allocation3 + $0x30] sm:$0xff]  ;;  %v1449_v16 = vld [vmem:[#allocation3 + $0x41] sm:$0xff]  ;;  %2775 = vmatprep.subr.bf16.mxu0 %v2774_v6 }
 0x306   :  { %1594 = vrot.lane.b32.xlu1 %v1447_v29, %s2813_s0  ;;  %v1465_v11 = vld [vmem:[#allocation3 + $0x42] sm:$0xff]  ;;  %v1450_v40 = vld [vmem:[#allocation3 + $0x51] sm:$0xff]  ;;  %2784 = vmatprep.subr.bf16.mxu1 %v2774_v6 }
 0x307   :  { %v3891_v53 = vld [vmem:[#allocation3 + $0x50] sm:$0xff]  ;;  %v3899_v31 = vld [vmem:[#allocation3 + $0x60] sm:$0xff] }
 0x308   :  { %2777 = vmatpush3.bf16.msra.mxu0 %v2774_v6  ;;  %2789 = vmatpush3.bf16.msra.mxu1 %v2774_v6  ;;  %v1466_v59 = vld [vmem:[#allocation3 + $0x52] sm:$0xff]  ;;  %v1451_v35 = vld [vmem:[#allocation3 + $0x61] sm:$0xff]  ;;  %v3951_v5 = vpop.permute.xlu0 %1988 }
 0x309   :  { %1720 = vrot.lane.b32.xlu0 %v3822_v62, %s2817_s29  ;;  %2779 = vmatprep.subr.bf16.mxu0 %v2778_v34  ;;  %v1452_v23 = vld [vmem:[#allocation3 + $0x71] sm:$0xff]  ;;  %v1514_v1 = vld [vmem:[#allocation3 + $0x62] sm:$0xff] }
 0x30a   :  { %1718 = vrot.lane.b32.xlu1 %v3824_v7, %s2817_s29  ;;  %2785 = vmatprep.subr.bf16.mxu1 %v2778_v34  ;;  %v1468_v21 = vld [vmem:[#allocation3 + $0x72] sm:$0xff]  ;;  %v1484_v33 = vld [vmem:[#allocation3 + $0x80] sm:$0xff] }
 0x30b   :  { %v3920_v18 = vld [vmem:[#allocation3 + $0x70] sm:$0xff]  ;;  %v1516_v42 = vld [vmem:[#allocation3 + $0x82] sm:$0xff] }
 0x30c   :  { %2781 = vmatpush3.bf16.msra.mxu0 %v2778_v34  ;;  %2790 = vmatpush3.bf16.msra.mxu1 %v2778_v34  ;;  %v1454_v44 = vld [vmem:[#allocation3 + $0xb1] sm:$0xff]  ;;  %v1500_v0 = vld [vmem:[#allocation3 + $0x81] sm:$0xff] }
 0x30d   :  { %1660 = vrot.lane.b32.xlu0 %v3830_v9, %s2815_s23  ;;  %2732 = vmatprep.subr.mxu0 %v2226_v37  ;;  %v1470_v15 = vld [vmem:[#allocation3 + $0xb2] sm:$0xff]  ;;  %v3959_v36 = vld [vmem:[#allocation3 + $0xc0] sm:$0xff] }
 0x30e   :  { %1658 = vrot.lane.b32.xlu1 %v1463_v10, %s2815_s23  ;;  %2786 = vmatprep.subr.mxu1 %v2226_v37  ;;  %v1455_v3 = vld [vmem:[#allocation3 + $0xc1] sm:$0xff]  ;;  %v3968_v51 = vld [vmem:[#allocation3 + $0xb0] sm:$0xff] }
 0x30f   :  { %v1456_v47 = vld [vmem:[#allocation3 + $0xd1] sm:$0xff]  ;;  %v1518_v28 = vld [vmem:[#allocation3 + $0xc2] sm:$0xff] }
 0x310   :  { %2733 = vmatpush3.msra.mxu0 %v2226_v37  ;;  %2791 = vmatpush3.msra.mxu1 %v2226_v37  ;;  %v4004_v45 = vld [vmem:[#allocation3 + $0xe0] sm:$0xff] }
 0x311   :  { %1784 = vrot.lane.b32.xlu0 %v1447_v29, %s2819_s14  ;;  %v4017_v24 = vld [vmem:[#allocation3 + $0xe1] sm:$0xff] }
 0x312   :  { %1782 = vrot.lane.b32.xlu1 %v1446_v38, %s2819_s14 }
 0x315   :  { %1724 = vrot.lane.b32.xlu0 %v3837_v13, %s2817_s29 }
 0x316   :  { %1722 = vrot.lane.b32.xlu1 %v3839_v4, %s2817_s29 }
 0x319   :  { %1848 = vrot.lane.b32.xlu0 %v1463_v10, %s2823_s3 }
 0x31a   :  { %1846 = vrot.lane.b32.xlu1 %v1462_v2, %s2823_s3 }
 0x31d   :  { %1598 = vrot.lane.b32.xlu0 %v1449_v16, %s2813_s0 }
 0x31e   :  { %1786 = vrot.lane.b32.xlu1 %v3817_v32, %s2819_s14 }
 0x321   :  { %1850 = vrot.lane.b32.xlu0 %v3830_v9, %s2823_s3 }
 0x322   :  { %1910 = vrot.lane.b32.xlu1 %v3822_v62, %s2821_s15 }
 0x325   :  { %1974 = vrot.lane.b32.xlu0 %v1447_v29, %s2822_s16 }
 0x326   :  { %1788 = vrot.lane.b32.xlu1 %v1449_v16, %s2819_s14 }
 0x329   :  { %1662 = vrot.lane.b32.xlu0 %v1465_v11, %s2815_s23 }
 0x32a   :  { %1912 = vrot.lane.b32.xlu1 %v3839_v4, %s2821_s15 }
 0x32d   :  { %1914 = vrot.lane.b32.xlu0 %v3837_v13, %s2821_s15 }
 0x32e   :  { %1600 = vrot.lane.b32.xlu1 %v1450_v40, %s2813_s0 }
 0x331   :  { %2038 = vrot.lane.b32.xlu0 %v1463_v10, %s2820_s1  ;;  %v3995_v10 = vld [vmem:[#allocation3 + $0xd0] sm:$0xff] }
 0x332   :  { %1852 = vrot.lane.b32.xlu1 %v1465_v11, %s2823_s3 }
 0x335   :  { %1726 = vrot.lane.b32.xlu0 %v3891_v53, %s2817_s29 }
 0x336   :  { %1976 = vrot.lane.b32.xlu1 %v3817_v32, %s2822_s16  ;;  %v1472_v32 = vld [vmem:[#allocation3 + $0xd2] sm:$0xff] }
 0x339   :  { %1978 = vrot.lane.b32.xlu0 %v1449_v16, %s2822_s16 }
 0x33a   :  { %1664 = vrot.lane.b32.xlu1 %v1466_v59, %s2815_s23 }
 0x33d   :  { %1728 = vrot.lane.b32.xlu0 %v3899_v31, %s2817_s29 }
 0x33e   :  { %1916 = vrot.lane.b32.xlu1 %v3891_v53, %s2821_s15 }
 0x341   :  { %1980 = vrot.lane.b32.xlu0 %v1450_v40, %s2822_s16 }
 0x342   :  { %2040 = vrot.lane.b32.xlu1 %v3830_v9, %s2820_s1 }
 0x345   :  { %1602 = vrot.lane.b32.xlu0 %v1451_v35, %s2813_s0 }
 0x346   :  { %1790 = vrot.lane.b32.xlu1 %v1450_v40, %s2819_s14 }
 0x349   :  { %1854 = vrot.lane.b32.xlu0 %v1466_v59, %s2823_s3 }
 0x34a   :  { %2042 = vrot.lane.b32.xlu1 %v1465_v11, %s2820_s1  ;;  %v1429_v11 = vld [vmem:[#allocation3] sm:$0xff] }
 0x34b   :  { %v2086_v30 = vsel %vm886_vm2, %v1429_v11, %v3918_v14 }
 0x34c   :  { %v2102_v17 = vsel %vm920_vm5, %v2086_v30, %v3931_v39 }
 0x34d   :  { %1604 = vrot.lane.b32.xlu0 %v1452_v23, %s2813_s0 }
 0x34e   :  { %1792 = vrot.lane.b32.xlu1 %v1451_v35, %s2819_s14 }
 0x351   :  { %1856 = vrot.lane.b32.xlu0 %v1514_v1, %s2823_s3 }
 0x352   :  { %2044 = vrot.lane.b32.xlu1 %v1466_v59, %s2820_s1 }
 0x355   :  { %1668 = vrot.lane.b32.xlu0 %v1468_v21, %s2815_s23 }
 0x356   :  { %1666 = vrot.lane.b32.xlu1 %v1514_v1, %s2815_s23 }
 0x359   :  { %1920 = vrot.lane.b32.xlu0 %v3920_v18, %s2821_s15 }
 0x35a   :  { %1918 = vrot.lane.b32.xlu1 %v3899_v31, %s2821_s15 }
 0x35d   :  { %1732 = vrot.lane.b32.xlu0 %v1484_v33, %s2817_s29 }
 0x35e   :  { %1730 = vrot.lane.b32.xlu1 %v3920_v18, %s2817_s29 }
 0x361   :  { %1984 = vrot.lane.b32.xlu0 %v1452_v23, %s2822_s16 }
 0x362   :  { %1982 = vrot.lane.b32.xlu1 %v1451_v35, %s2822_s16  ;;  %v1458_v35 = vld [vmem:[#allocation3 + $0xf1] sm:$0xff] }
 0x365   :  { %1858 = vrot.lane.b32.xlu0 %v1468_v21, %s2823_s3 }
 0x366   :  { %1794 = vrot.lane.b32.xlu1 %v1452_v23, %s2819_s14 }
 0x369   :  { %1608 = vrot.lane.b32.xlu0 %v1454_v44, %s2813_s0 }
 0x36a   :  { %2046 = vrot.lane.b32.xlu1 %v1514_v1, %s2820_s1 }
 0x36d   :  { %1860 = vrot.lane.b32.xlu0 %v1516_v42, %s2823_s3 }
 0x36e   :  { %1796 = vrot.lane.b32.xlu1 %v1500_v0, %s2819_s14 }
 0x371   :  { %1672 = vrot.lane.b32.xlu0 %v1470_v15, %s2815_s23 }
 0x372   :  { %2048 = vrot.lane.b32.xlu1 %v1468_v21, %s2820_s1 }
 0x373   :  { %v3957_v48 = vpop.permute.xlu0 %1656 }
 0x374   :  { %v3955_v46 = vpop.permute.xlu1 %1592 }
 0x375   :  { %1736 = vrot.lane.b32.xlu0 %v3959_v36, %s2817_s29 }
 0x376   :  { %1922 = vrot.lane.b32.xlu1 %v1484_v33, %s2821_s15 }
 0x377   :  { %v3966_v22 = vpop.permute.xlu0 %1596 }
 0x378   :  { %v3964_v49 = vpop.permute.xlu1 %1594 }
 0x379   :  { %1610 = vrot.lane.b32.xlu0 %v1455_v3, %s2813_s0 }
 0x37a   :  { %1734 = vrot.lane.b32.xlu1 %v3968_v51, %s2817_s29 }
 0x37b   :  { %v3973_v54 = vpop.permute.xlu0 %1720 }
 0x37c   :  { %v1719_v52 = vpop.permute.xlu1 %1718 }
 0x37d   :  { %1862 = vrot.lane.b32.xlu0 %v1470_v15, %s2823_s3  ;;  %v2118_v56 = vsel %vm954_vm7, %v2102_v17, %v1719_v52  ;;  %v4046_v15 = vld [vmem:[#allocation3 + $0xf2] sm:$0xff] }
 0x37e   :  { %1986 = vrot.lane.b32.xlu1 %v1500_v0, %s2822_s16 }
 0x37f   :  { %v3979_v63 = vpop.permute.xlu0 %1660 }
 0x380   :  { %v3977_v58 = vpop.permute.xlu1 %1658 }
 0x381   :  { %1612 = vrot.lane.b32.xlu0 %v1456_v47, %s2813_s0 }
 0x382   :  { %1798 = vrot.lane.b32.xlu1 %v1454_v44, %s2819_s14  ;;  %v1520_v44 = vld [vmem:[#allocation3 + $0xe2] sm:$0xff] }
 0x383   :  { %v3983_v8 = vpop.permute.xlu0 %1784 }
 0x384   :  { %v1783_v27 = vpop.permute.xlu1 %1782 }
 0x385   :  { %1864 = vrot.lane.b32.xlu0 %v1518_v28, %s2823_s3  ;;  %v2134_v59 = vsel %vm988_vm9, %v2118_v56, %v1783_v27  ;;  %v4056_v27 = vld [vmem:[#allocation3 + $0xf0] sm:$0xff] }
 0x386   :  { %2050 = vrot.lane.b32.xlu1 %v1516_v42, %s2820_s1 }
 0x387   :  { %v3989_v38 = vpop.permute.xlu0 %1724 }
 0x388   :  { %v3987_v2 = vpop.permute.xlu1 %1722 }
 0x389   :  { %1676 = vrot.lane.b32.xlu0 %v1472_v32, %s2815_s23 }
 0x38a   :  { %1800 = vrot.lane.b32.xlu1 %v1455_v3, %s2819_s14 }
 0x38b   :  { %v3993_v9 = vpop.permute.xlu0 %1848 }
 0x38c   :  { %v1847_v29 = vpop.permute.xlu1 %1846 }
 0x38d   :  { %1928 = vrot.lane.b32.xlu0 %v3995_v10, %s2821_s15  ;;  %v2151_v23 = vsel %vm2150_vm12, %v2134_v59, %v1847_v29 }
 0x38e   :  { %1674 = vrot.lane.b32.xlu1 %v1518_v28, %s2815_s23 }
 0x38f   :  { %v4002_v41 = vpop.permute.xlu0 %1598 }
 0x390   :  { %v4000_v16 = vpop.permute.xlu1 %1786 }
 0x391   :  { %1740 = vrot.lane.b32.xlu0 %v4004_v45, %s2817_s29 }
 0x392   :  { %1926 = vrot.lane.b32.xlu1 %v3959_v36, %s2821_s15 }
 0x393   :  { %v4010_v61 = vpop.permute.xlu0 %1850 }
 0x394   :  { %v1911_v20 = vpop.permute.xlu1 %1910 }
 0x395   :  { %1992 = vrot.lane.b32.xlu0 %v1456_v47, %s2822_s16  ;;  %v2168_v1 = vsel %vm2167_vm13, %v2151_v23, %v1911_v20 }
 0x396   :  { %1738 = vrot.lane.b32.xlu1 %v3995_v10, %s2817_s29 }
 0x397   :  { %v1975_v57 = vpop.permute.xlu0 %1974 }
 0x398   :  { %v4015_v26 = vpop.permute.xlu1 %1788  ;;  %v2185_v21 = vsel %vm2184_vm14, %v2168_v1, %v1975_v57 }
 0x399   :  { %1614 = vrot.lane.b32.xlu0 %v4017_v24, %s2813_s0 }
 0x39a   :  { %1990 = vrot.lane.b32.xlu1 %v1455_v3, %s2822_s16  ;;  %v2087_v3 = vsel %vm886_vm2, %v3824_v7, %v3955_v46  ;;  %v4069_v46 = vld [vmem:[#allocation3 + $0x100] sm:$0xff] }
 0x39b   :  { %v4024_v40 = vpop.permute.xlu0 %1662 }
 0x39c   :  { %v1913_v6 = vpop.permute.xlu1 %1912 }
 0x39d   :  { %1866 = vrot.lane.b32.xlu0 %v1472_v32, %s2823_s3 }
 0x39e   :  { %1802 = vrot.lane.b32.xlu1 %v1456_v47, %s2819_s14 }
 0x39f   :  { %v1915_v37 = vpop.permute.xlu0 %1914 }
 0x3a0   :  { %v4031_v34 = vpop.permute.xlu1 %1600 }
 0x3a1   :  { %1616 = vrot.lane.b32.xlu0 %v1458_v35, %s2813_s0 }
 0x3a2   :  { %2054 = vrot.lane.b32.xlu1 %v1518_v28, %s2820_s1  ;;  %v2103_v28 = vsel %vm920_vm5, %v2087_v3, %v3957_v48 }
 0x3a3   :  { %v2039_v33 = vpop.permute.xlu0 %2038 }
 0x3a4   :  { %v1853_v14 = vpop.permute.xlu1 %1852  ;;  %v2202_v39 = vsel %vm2201_vm15, %v2185_v21, %v2039_v33 }
 0x3a5   :  { %1868 = vrot.lane.b32.xlu0 %v1520_v44, %s2823_s3  ;;  %2734 = vmatprep.mubr.msk.f32.mxu0 %vm2227_vm0, %v2202_v39 }
 0x3a6   :  { %1804 = vrot.lane.b32.xlu1 %v4017_v24, %s2819_s14 }
 0x3a7   :  { %v4044_v0 = vpop.permute.xlu0 %1726 }
 0x3a8   :  { %v1977_v42 = vpop.permute.xlu1 %1976 }
 0x3a9   :  { %1680 = vrot.lane.b32.xlu0 %v4046_v15, %s2815_s23 }
 0x3aa   :  { %2056 = vrot.lane.b32.xlu1 %v1472_v32, %s2820_s1  ;;  %v2119_v32 = vsel %vm954_vm7, %v2103_v28, %v3973_v54  ;;  %v1522_v28 = vld [vmem:[#allocation3 + $0x102] sm:$0xff] }
 0x3ab   :  { %v1979_v47 = vpop.permute.xlu0 %1978  ;;  %v2135_v7 = vsel %vm988_vm9, %v2119_v32, %v3983_v8  ;;  %v2088_v8 = vsel %vm886_vm2, %v3822_v62, %v3964_v49  ;;  %v1459_v62 = vld [vmem:[#allocation3 + $0x101] sm:$0xff] }
 0x3ac   :  { %v4054_v52 = vpop.permute.xlu1 %1664  ;;  %v2152_v57 = vsel %vm2150_vm12, %v2135_v7, %v3993_v9  ;;  %v2104_v9 = vsel %vm920_vm5, %v2088_v8, %v3977_v58  ;;  %v4132_v7 = vld [vmem:[#allocation3 + $0x110] sm:$0xff] }
 0x3ad   :  { %1932 = vrot.lane.b32.xlu0 %v4056_v27, %s2821_s15  ;;  %v2169_v48 = vsel %vm2167_vm13, %v2152_v57, %v1913_v6  ;;  %v2120_v6 = vsel %vm954_vm7, %v2104_v9, %v3987_v2 }
 0x3ae   :  { %1678 = vrot.lane.b32.xlu1 %v1520_v44, %s2815_s23  ;;  %v2186_v54 = vsel %vm2184_vm14, %v2169_v48, %v1977_v42  ;;  %v2136_v23 = vsel %vm988_vm9, %v2120_v6, %v4000_v16  ;;  %v2089_v16 = vsel %vm886_vm2, %v3839_v4, %v3966_v22  ;;  %v1460_v4 = vld [vmem:[#allocation3 + $0x111] sm:$0xff] }
 0x3af   :  { %v4065_v20 = vpop.permute.xlu0 %1728  ;;  %v2153_v49 = vsel %vm2150_vm12, %v2136_v23, %v4010_v61  ;;  %v2105_v61 = vsel %vm920_vm5, %v2089_v16, %v3979_v63 }
 0x3b0   :  { %v1917_v29 = vpop.permute.xlu1 %1916  ;;  %v2170_v58 = vsel %vm2167_vm13, %v2153_v49, %v1915_v37  ;;  %v1508_v49 = vld [vmem:[#allocation3 + $0x121] sm:$0xff] }
 0x3b1   :  { %1744 = vrot.lane.b32.xlu0 %v4069_v46, %s2817_s29  ;;  %v2187_v1 = vsel %vm2184_vm14, %v2170_v58, %v1979_v47 }
 0x3b2   :  { %1930 = vrot.lane.b32.xlu1 %v4004_v45, %s2821_s15 }
 0x3b3   :  { %v1981_v30 = vpop.permute.xlu0 %1980 }
 0x3b4   :  { %v2041_v11 = vpop.permute.xlu1 %2040 }
 0x3b5   :  { %v2203_v17 = vsel %vm2201_vm15, %v2186_v54, %v2041_v11  ;;  %1996 = vrot.lane.b32.xlu0 %v1458_v35, %s2822_s16  ;;  %v1492_v54 = vld [vmem:[#allocation3 + $0x120] sm:$0xff] }
 0x3b6   :  { %1742 = vrot.lane.b32.xlu1 %v4056_v27, %s2817_s29  ;;  %2735 = vmatmul.mubr.msk.f32.vlgmr.msra.gmra.mrb[16].mxu0 %vm2227_vm0, %v2203_v17 }
 0x3b7   :  { %v4091_v59 = vpop.permute.xlu0 %1602 }
 0x3b8   :  { %v1791_v56 = vpop.permute.xlu1 %1790 }
 0x3b9   :  { %1618 = vrot.lane.b32.xlu0 %v1459_v62, %s2813_s0 }
 0x3ba   :  { %1994 = vrot.lane.b32.xlu1 %v4017_v24, %s2822_s16  ;;  %v2121_v24 = vsel %vm954_vm7, %v2105_v61, %v3989_v38 }
 0x3bb   :  { %v1855_v21 = vpop.permute.xlu0 %1854  ;;  %v2137_v42 = vsel %vm988_vm9, %v2121_v24, %v4015_v26 }
 0x3bc   :  { %v2043_v2 = vpop.permute.xlu1 %2042  ;;  %v2154_v22 = vsel %vm2150_vm12, %v2137_v42, %v1853_v14 }
 0x3bd   :  { %v2204_v33 = vsel %vm2201_vm15, %v2187_v1, %v2043_v2  ;;  %1870 = vrot.lane.b32.xlu0 %v4046_v15, %s2823_s3  ;;  %v2171_v63 = vsel %vm2167_vm13, %v2154_v22, %v1917_v29 }
 0x3be   :  { %1806 = vrot.lane.b32.xlu1 %v1458_v35, %s2819_s14  ;;  %2737 = vmatprep.mubr.msk.f32.mxu1 %vm2227_vm0, %v2204_v33  ;;  %v2188_v35 = vsel %vm2184_vm14, %v2171_v63, %v1981_v30  ;;  %v2090_v30 = vsel %vm886_vm2, %v3837_v13, %v4002_v41  ;;  %v1573_v63 = vld [vmem:[#allocation3 + $0x132] sm:$0xff] }
 0x3bf   :  { %v4114_v39 = vpop.permute.xlu0 %1604  ;;  %v2106_v17 = vsel %vm920_vm5, %v2090_v30, %v4024_v40 }
 0x3c0   :  { %v1793_v37 = vpop.permute.xlu1 %1792  ;;  %v2122_v8 = vsel %vm954_vm7, %v2106_v17, %v4044_v0  ;;  %v2093_v22 = vsel %vm886_vm2, %v3920_v18, %v4114_v39 }
 0x3c1   :  { %1620 = vrot.lane.b32.xlu0 %v1460_v4, %s2813_s0  ;;  %v2138_v23 = vsel %vm988_vm9, %v2122_v8, %v1791_v56  ;;  %v2091_v56 = vsel %vm886_vm2, %v3891_v53, %v4031_v34 }
 0x3c2   :  { %2058 = vrot.lane.b32.xlu1 %v1520_v44, %s2820_s1  ;;  %v1476_v44 = vld [vmem:[#allocation3 + $0x112] sm:$0xff]  ;;  %v2155_v58 = vsel %vm2150_vm12, %v2138_v23, %v1855_v21 }
 0x3c3   :  { %v1857_v47 = vpop.permute.xlu0 %1856 }
 0x3c4   :  { %v2045_v3 = vpop.permute.xlu1 %2044 }
 0x3c5   :  { %v2205_v38 = vsel %vm2201_vm15, %v2188_v35, %v2045_v3  ;;  %1872 = vrot.lane.b32.xlu0 %v1522_v28, %s2823_s3 }
 0x3c6   :  { %1808 = vrot.lane.b32.xlu1 %v1459_v62, %s2819_s14  ;;  %2738 = vmatmul.mubr.msk.f32.vlgmr.msra.gmra.mrb[0].mxu1 %vm2227_vm0, %v2205_v38 }
 0x3c7   :  { %v1669_v14 = vpop.permute.xlu0 %1668 }
 0x3c8   :  { %v4127_v26 = vpop.permute.xlu1 %1666  ;;  %v2109_v35 = vsel %vm920_vm5, %v2093_v22, %v1669_v14 }
 0x3c9   :  { %1684 = vrot.lane.b32.xlu0 %v1476_v44, %s2815_s23 }
 0x3ca   :  { %2060 = vrot.lane.b32.xlu1 %v4046_v15, %s2820_s1 }
 0x3cb   :  { %v1921_v29 = vpop.permute.xlu0 %1920 }
 0x3cc   :  { %v1919_v32 = vpop.permute.xlu1 %1918 }
 0x3cd   :  { %1936 = vrot.lane.b32.xlu0 %v4132_v7, %s2821_s15  ;;  %v2172_v13 = vsel %vm2167_vm13, %v2155_v58, %v1919_v32 }
 0x3ce   :  { %1682 = vrot.lane.b32.xlu1 %v1522_v28, %s2815_s23 }
 0x3cf   :  { %v1733_v48 = vpop.permute.xlu0 %1732 }
 0x3d0   :  { %v4137_v57 = vpop.permute.xlu1 %1730  ;;  %v2125_v38 = vsel %vm954_vm7, %v2109_v35, %v1733_v48 }
 0x3d1   :  { %1748 = vrot.lane.b32.xlu0 %v1492_v54, %s2817_s29 }
 0x3d2   :  { %1934 = vrot.lane.b32.xlu1 %v4069_v46, %s2821_s15 }
 0x3d3   :  { %v1985_v11 = vpop.permute.xlu0 %1984 }
 0x3d4   :  { %v1983_v15 = vpop.permute.xlu1 %1982 }
 0x3d5   :  { %2000 = vrot.lane.b32.xlu0 %v1460_v4, %s2822_s16  ;;  %v2189_v41 = vsel %vm2184_vm14, %v2172_v13, %v1983_v15 }
 0x3d6   :  { %1746 = vrot.lane.b32.xlu1 %v4132_v7, %s2817_s29 }
 0x3d7   :  { %v1859_v6 = vpop.permute.xlu0 %1858 }
 0x3d8   :  { %v1795_v9 = vpop.permute.xlu1 %1794 }
 0x3d9   :  { %1812 = vrot.lane.b32.xlu0 %v1508_v49, %s2819_s14 }
 0x3da   :  { %1998 = vrot.lane.b32.xlu1 %v1459_v62, %s2822_s16  ;;  %v2107_v62 = vsel %vm920_vm5, %v2091_v56, %v4054_v52 }
 0x3db   :  { %v4158_v40 = vpop.permute.xlu0 %1608  ;;  %v2123_v2 = vsel %vm954_vm7, %v2107_v62, %v4065_v20 }
 0x3dc   :  { %v2047_v1 = vpop.permute.xlu1 %2046  ;;  %v2139_v16 = vsel %vm988_vm9, %v2123_v2, %v1793_v37 }
 0x3dd   :  { %v2206_v0 = vsel %vm2201_vm15, %v2189_v41, %v2047_v1  ;;  %2064 = vrot.lane.b32.xlu0 %v1476_v44, %s2820_s1  ;;  %v2156_v61 = vsel %vm2150_vm12, %v2139_v16, %v1857_v47 }
 0x3de   :  { %1810 = vrot.lane.b32.xlu1 %v1460_v4, %s2819_s14  ;;  %2740 = vmatprep.mubr.msk.f32.mxu1 %vm2227_vm0, %v2206_v0  ;;  %v2173_v53 = vsel %vm2167_vm13, %v2156_v61, %v1921_v29  ;;  %v1524_v4 = vld [vmem:[#allocation3 + $0x122] sm:$0xff] }
 0x3df   :  { %v1861_v33 = vpop.permute.xlu0 %1860  ;;  %v2190_v34 = vsel %vm2184_vm14, %v2173_v53, %v1985_v11 }
 0x3e0   :  { %v1797_v21 = vpop.permute.xlu1 %1796 }
 0x3e1   :  { %1938 = vrot.lane.b32.xlu0 %v1492_v54, %s2821_s15 }
 0x3e2   :  { %2062 = vrot.lane.b32.xlu1 %v1522_v28, %s2820_s1  ;;  %v2141_v28 = vsel %vm988_vm9, %v2125_v38, %v1797_v21 }
 0x3e3   :  { %v1673_v24 = vpop.permute.xlu0 %1672  ;;  %v2158_v39 = vsel %vm2150_vm12, %v2141_v28, %v1861_v33 }
 0x3e4   :  { %v2049_v52 = vpop.permute.xlu1 %2048  ;;  %v2175_v54 = vsel %vm2167_vm13, %v2158_v39, %v3943_v43 }
 0x3e5   :  { %v2207_v42 = vsel %vm2201_vm15, %v2190_v34, %v2049_v52  ;;  %2002 = vrot.lane.b32.xlu0 %v1508_v49, %s2822_s16 }
 0x3e6   :  { %1874 = vrot.lane.b32.xlu1 %v1476_v44, %s2823_s3  ;;  %2741 = vmatmul.mubr.msk.f32.gmra.mrb[2].mxu1 %vm2227_vm0, %v2207_v42  ;;  %v2092_v44 = vsel %vm886_vm2, %v3899_v31, %v4091_v59 }
 0x3e7   :  { %v1737_v37 = vpop.permute.xlu0 %1736  ;;  %v2108_v18 = vsel %vm920_vm5, %v2092_v44, %v4127_v26  ;;  %v2192_v26 = vsel %vm2184_vm14, %v2175_v54, %v3951_v5  ;;  %v1437_v5 = vld [vmem:[#allocation3 + $0xa0] sm:$0xff] }
 0x3e8   :  { %v1923_v20 = vpop.permute.xlu1 %1922  ;;  %v2124_v14 = vsel %vm954_vm7, %v2108_v18, %v4137_v57  ;;  %v2209_v43 = vsel %vm2201_vm15, %v2192_v26, %v3935_v12  ;;  %v2094_v0 = vsel %vm886_vm2, %v1437_v5, %v3937_v25  ;;  %v2095_v25 = vsel %vm886_vm2, %v3968_v51, %v4158_v40 }
 0x3e9   :  { %2066 = vrot.lane.b32.xlu0 %v1524_v4, %s2820_s1  ;;  %v2140_v48 = vsel %vm988_vm9, %v2124_v14, %v1795_v9  ;;  %v2110_v12 = vsel %vm920_vm5, %v2094_v0, %v3926_v19  ;;  %v2111_v19 = vsel %vm920_vm5, %v2095_v25, %v1673_v24 }
 0x3ea   :  { %1876 = vrot.lane.b32.xlu1 %v1524_v4, %s2823_s3  ;;  %v2157_v31 = vsel %vm2150_vm12, %v2140_v48, %v1859_v6  ;;  %v2127_v4 = vsel %vm954_vm7, %v2111_v19, %v1737_v37 }
 0x3eb   :  { %v4187_v47 = vpop.permute.xlu0 %1610  ;;  %v2174_v59 = vsel %vm2167_vm13, %v2157_v31, %v1923_v20 }
 0x3ec   :  { %v1735_v3 = vpop.permute.xlu1 %1734  ;;  %v2096_v14 = vsel %vm886_vm2, %v3959_v36, %v4187_v47 }
 0x3ed   :  { %v2126_v2 = vsel %vm954_vm7, %v2110_v12, %v1735_v3 }
 0x3ee   :  { %2068 = vrot.lane.b32.xlu1 %v1573_v63, %s2820_s1 }
 0x3ef   :  { %v1863_v29 = vpop.permute.xlu0 %1862 }
 0x3f0   :  { %v1987_v32 = vpop.permute.xlu1 %1986 }
 0x3f1   :  { %v2191_v30 = vsel %vm2184_vm14, %v2174_v59, %v1987_v32 }
 0x3f3   :  { %v4203_v11 = vpop.permute.xlu0 %1612 }
 0x3f4   :  { %v1799_v15 = vpop.permute.xlu1 %1798 }
 0x3f5   :  { %v2142_v21 = vsel %vm988_vm9, %v2126_v2, %v1799_v15 }
 0x3f6   :  { %v2159_v61 = vsel %vm2150_vm12, %v2142_v21, %v1863_v29 }
 0x3f7   :  { %v1865_v8 = vpop.permute.xlu0 %1864 }
 0x3f8   :  { %v2051_v17 = vpop.permute.xlu1 %2050 }
 0x3f9   :  { %v2208_v57 = vsel %vm2201_vm15, %v2191_v30, %v2051_v17 }
 0x3fa   :  { %2743 = vmatprep.mubr.msk.f32.mxu1 %vm2227_vm0, %v2208_v57  ;;  %v2097_v57 = vsel %vm886_vm2, %v3995_v10, %v4203_v11 }
 0x3fb   :  { %2744 = vmatmul.mubr.msk.f32.gmra.mrb[4].mxu1 %vm2227_vm0, %v2209_v43  ;;  %v1677_v6 = vpop.permute.xlu0 %1676 }
 0x3fc   :  { %v1801_v9 = vpop.permute.xlu1 %1800 }
 0x3fd   :  { %v2143_v22 = vsel %vm988_vm9, %v2127_v4, %v1801_v9  ;;  %v2113_v9 = vsel %vm920_vm5, %v2097_v57, %v1677_v6 }
 0x3fe   :  { %v2160_v3 = vsel %vm2150_vm12, %v2143_v22, %v1865_v8 }
 0x3ff   :  { %v1929_v49 = vpop.permute.xlu0 %1928 }
 0x400   :  { %v1675_v23 = vpop.permute.xlu1 %1674  ;;  %v2177_v51 = vsel %vm2167_vm13, %v2160_v3, %v1929_v49 }
 0x401   :  { %v2112_v15 = vsel %vm920_vm5, %v2096_v14, %v1675_v23 }
 0x403   :  { %v1741_v13 = vpop.permute.xlu0 %1740 }
 0x404   :  { %v1927_v58 = vpop.permute.xlu1 %1926  ;;  %v2129_v49 = vsel %vm954_vm7, %v2113_v9, %v1741_v13 }
 0x405   :  { %v2176_v53 = vsel %vm2167_vm13, %v2159_v61, %v1927_v58 }
 0x407   :  { %v1993_v1 = vpop.permute.xlu0 %1992 }
 0x408   :  { %v1739_v41 = vpop.permute.xlu1 %1738  ;;  %v2194_v40 = vsel %vm2184_vm14, %v2177_v51, %v1993_v1 }
 0x409   :  { %v2128_v31 = vsel %vm954_vm7, %v2112_v15, %v1739_v41 }
 0x40b   :  { %v4217_v62 = vpop.permute.xlu0 %1614 }
 0x40c   :  { %v1991_v56 = vpop.permute.xlu1 %1990  ;;  %v2098_v61 = vsel %vm886_vm2, %v4004_v45, %v4217_v62 }
 0x40d   :  { %v2193_v34 = vsel %vm2184_vm14, %v2176_v53, %v1991_v56 }
 0x40f   :  { %v1867_v16 = vpop.permute.xlu0 %1866 }
 0x410   :  { %v1803_v33 = vpop.permute.xlu1 %1802 }
 0x411   :  { %v2144_v59 = vsel %vm988_vm9, %v2128_v31, %v1803_v33 }
 0x412   :  { %v2161_v17 = vsel %vm2150_vm12, %v2144_v59, %v1867_v16 }
 0x413   :  { %v1617_v42 = vpop.permute.xlu0 %1616 }
 0x414   :  { %v2055_v52 = vpop.permute.xlu1 %2054 }
 0x415   :  { %v2210_v20 = vsel %vm2201_vm15, %v2193_v34, %v2055_v52  ;;  %v2099_v34 = vsel %vm886_vm2, %v4056_v27, %v1617_v42 }
 0x416   :  { %2746 = vmatprep.mubr.msk.f32.mxu1 %vm2227_vm0, %v2210_v20 }
 0x417   :  { %v1869_v35 = vpop.permute.xlu0 %1868 }
 0x418   :  { %v1805_v63 = vpop.permute.xlu1 %1804 }
 0x419   :  { %v2145_v58 = vsel %vm988_vm9, %v2129_v49, %v1805_v63 }
 0x41a   :  { %v2162_v1 = vsel %vm2150_vm12, %v2145_v58, %v1869_v35 }
 0x41b   :  { %v1681_v28 = vpop.permute.xlu0 %1680 }
 0x41c   :  { %v2057_v38 = vpop.permute.xlu1 %2056  ;;  %v2115_v19 = vsel %vm920_vm5, %v2099_v34, %v1681_v28 }
 0x41d   :  { %v2211_v24 = vsel %vm2201_vm15, %v2194_v40, %v2057_v38 }
 0x41e   :  { %2747 = vmatmul.mubr.msk.f32.gmra.mrb[6].mxu1 %vm2227_vm0, %v2211_v24 }
 0x41f   :  { %v1933_v37 = vpop.permute.xlu0 %1932 }
 0x420   :  { %v1679_v44 = vpop.permute.xlu1 %1678  ;;  %v2179_v10 = vsel %vm2167_vm13, %v2162_v1, %v1933_v37 }
 0x421   :  { %v2114_v52 = vsel %vm920_vm5, %v2098_v61, %v1679_v44 }
 0x423   :  { %v1745_v29 = vpop.permute.xlu0 %1744 }
 0x424   :  { %v1931_v32 = vpop.permute.xlu1 %1930  ;;  %v2131_v4 = vsel %vm954_vm7, %v2115_v19, %v1745_v29 }
 0x425   :  { %v2178_v8 = vsel %vm2167_vm13, %v2161_v17, %v1931_v32 }
 0x427   :  { %v1997_v39 = vpop.permute.xlu0 %1996 }
 0x428   :  { %v1743_v18 = vpop.permute.xlu1 %1742  ;;  %v2196_v11 = vsel %vm2184_vm14, %v2179_v10, %v1997_v39 }
 0x429   :  { %v2130_v20 = vsel %vm954_vm7, %v2114_v52, %v1743_v18 }
 0x42b   :  { %v1619_v54 = vpop.permute.xlu0 %1618 }
 0x42c   :  { %v1995_v48 = vpop.permute.xlu1 %1994  ;;  %v2100_v28 = vsel %vm886_vm2, %v4069_v46, %v1619_v54 }
 0x42d   :  { %v2195_v36 = vsel %vm2184_vm14, %v2178_v8, %v1995_v48 }
 0x42f   :  { %v1871_v30 = vpop.permute.xlu0 %1870 }
 0x430   :  { %v1807_v26 = vpop.permute.xlu1 %1806 }
 0x431   :  { %v2146_v22 = vsel %vm988_vm9, %v2130_v20, %v1807_v26 }
 0x432   :  { %v2163_v45 = vsel %vm2150_vm12, %v2146_v22, %v1871_v30 }
 0x433   :  { %v1621_v43 = vpop.permute.xlu0 %1620 }
 0x434   :  { %v2059_v47 = vpop.permute.xlu1 %2058  ;;  %v2101_v46 = vsel %vm886_vm2, %v4132_v7, %v1621_v43 }
 0x435   :  { %v2212_v23 = vsel %vm2201_vm15, %v2195_v36, %v2059_v47 }
 0x436   :  { %2749 = vmatprep.mubr.msk.f32.mxu1 %vm2227_vm0, %v2212_v23 }
 0x437   :  { %v1873_v41 = vpop.permute.xlu0 %1872 }
 0x438   :  { %v1809_v5 = vpop.permute.xlu1 %1808 }
 0x439   :  { %v2147_v63 = vsel %vm988_vm9, %v2131_v4, %v1809_v5 }
 0x43a   :  { %v2164_v62 = vsel %vm2150_vm12, %v2147_v63, %v1873_v41 }
 0x43b   :  { %v1685_v56 = vpop.permute.xlu0 %1684 }
 0x43c   :  { %v2061_v0 = vpop.permute.xlu1 %2060  ;;  %v2117_v54 = vsel %vm920_vm5, %v2101_v46, %v1685_v56 }
 0x43d   :  { %v2213_v6 = vsel %vm2201_vm15, %v2196_v11, %v2061_v0 }
 0x43e   :  { %2750 = vmatmul.mubr.msk.f32.gmra.mrb[8].mxu1 %vm2227_vm0, %v2213_v6 }
 0x43f   :  { %v1937_v13 = vpop.permute.xlu0 %1936 }
 0x440   :  { %v1683_v12 = vpop.permute.xlu1 %1682  ;;  %v2181_v42 = vsel %vm2167_vm13, %v2164_v62, %v1937_v13 }
 0x441   :  { %v2116_v37 = vsel %vm920_vm5, %v2100_v28, %v1683_v12 }
 0x443   :  { %v1749_v21 = vpop.permute.xlu0 %1748 }
 0x444   :  { %v1935_v2 = vpop.permute.xlu1 %1934  ;;  %v2133_v31 = vsel %vm954_vm7, %v2117_v54, %v1749_v21 }
 0x445   :  { %v2180_v27 = vsel %vm2167_vm13, %v2163_v45, %v1935_v2 }
 0x447   :  { %v2001_v16 = vpop.permute.xlu0 %2000 }
 0x448   :  { %v1747_v33 = vpop.permute.xlu1 %1746  ;;  %v2198_v24 = vsel %vm2184_vm14, %v2181_v42, %v2001_v16 }
 0x449   :  { %v2132_v29 = vsel %vm954_vm7, %v2116_v37, %v1747_v33 }
 0x44b   :  { %v1813_v25 = vpop.permute.xlu0 %1812 }
 0x44c   :  { %v1999_v53 = vpop.permute.xlu1 %1998  ;;  %v2149_v26 = vsel %vm988_vm9, %v2133_v31, %v1813_v25 }
 0x44d   :  { %v2197_v51 = vsel %vm2184_vm14, %v2180_v27, %v1999_v53 }
 0x44f   :  { %v2065_v3 = vpop.permute.xlu0 %2064 }
 0x450   :  { %v1811_v35 = vpop.permute.xlu1 %1810  ;;  %v2215_v32 = vsel %vm2201_vm15, %v2198_v24, %v2065_v3 }
 0x451   :  { %v2148_v18 = vsel %vm988_vm9, %v2132_v29, %v1811_v35 }
 0x453   :  { %v1939_v38 = vpop.permute.xlu0 %1938 }
 0x454   :  { %v2063_v40 = vpop.permute.xlu1 %2062 }
 0x455   :  { %v2214_v44 = vsel %vm2201_vm15, %v2197_v51, %v2063_v40 }
 0x456   :  { %2752 = vmatprep.mubr.msk.f32.mxu1 %vm2227_vm0, %v2214_v44 }
 0x457   :  { %2753 = vmatmul.mubr.msk.f32.gmra.mrb[10].mxu1 %vm2227_vm0, %v2215_v32  ;;  %v2003_v14 = vpop.permute.xlu0 %2002 }
 0x458   :  { %v1875_v39 = vpop.permute.xlu1 %1874 }
 0x459   :  { %v2165_v48 = vsel %vm2150_vm12, %v2148_v18, %v1875_v39 }
 0x45a   :  { %v2182_v15 = vsel %vm2167_vm13, %v2165_v48, %v1939_v38 }
 0x45b   :  { %v2199_v59 = vsel %vm2184_vm14, %v2182_v15, %v2003_v14  ;;  %v2067_v17 = vpop.permute.xlu0 %2066 }
 0x45c   :  { %v1877_v30 = vpop.permute.xlu1 %1876  ;;  %v2216_v57 = vsel %vm2201_vm15, %v2199_v59, %v2067_v17 }
 0x45d   :  { %v2166_v8 = vsel %vm2150_vm12, %v2149_v26, %v1877_v30  ;;  %2755 = vmatprep.mubr.msk.f32.mxu1 %vm2227_vm0, %v2216_v57 }
 0x45e   :  { %v2183_v7 = vsel %vm2167_vm13, %v2166_v8, %v3941_v50 }
 0x45f   :  { %v2200_v36 = vsel %vm2184_vm14, %v2183_v7, %v3949_v60 }
 0x460   :  { %v2069_v47 = vpop.permute.xlu1 %2068 }
 0x461   :  { %v2217_v43 = vsel %vm2201_vm15, %v2200_v36, %v2069_v47 }
 0x462   :  { %2756 = vmatmul.mubr.msk.f32.gmra.mrb[12].mxu1 %vm2227_vm0, %v2217_v43 }
 0x489   :  { %v4304_v9 = vpop.f32.mrb[16].mxu0 }
 0x48a   :  { %v2424_v23 = vsel %vm886_vm2, %v4304_v9, 0.0  ;;  %v2462_v49 = vmul.f32 %v4304_v9, %v4304_v9  ;;  %v4310_v58 = vpop.f32.mrb[17].mxu0 }
 0x48b   :  { %v2423_v50 = vsel %vm886_vm2, %v4310_v58, 0.0  ;;  %v2461_v60 = vmul.f32 %v4310_v58, %v4310_v58 }
 0x48c   :  { %v2478_v5 = vsel %vm886_vm2, %v2462_v49, 0.0  ;;  %v2425_v41 = vadd.f32 %v2424_v23, %v2423_v50 }
 0x48d   :  { %v2477_v1 = vsel %vm886_vm2, %v2461_v60, 0.0 }
 0x48e   :  { %v2479_v10 = vadd.f32 %v2478_v5, %v2477_v1 }
 0x499   :  { %v4318_v11 = vpop.f32.mrb[0].mxu1 }
 0x49a   :  { %v4320_v0 = vpop.f32.mrb[1].mxu1  ;;  %v2464_v56 = vmul.f32 %v4318_v11, %v4318_v11  ;;  %v2428_v2 = vsel %vm886_vm2, %v4318_v11, 0.0 }
 0x49b   :  { %v2426_v6 = vsel %vm886_vm2, %v4320_v0, 0.0  ;;  %v2463_v12 = vmul.f32 %v4320_v0, %v4320_v0 }
 0x49c   :  { %v2427_v13 = vadd.f32 %v2426_v6, %v2425_v41  ;;  %v2482_v61 = vsel %vm886_vm2, %v2464_v56, 0.0 }
 0x49d   :  { %v2480_v21 = vsel %vm886_vm2, %v2463_v12, 0.0 }
 0x49e   :  { %v2481_v33 = vadd.f32 %v2480_v21, %v2479_v10  ;;  %v2429_v16 = vadd.f32 %v2428_v2, %v2427_v13 }
 0x4a0   :  { %v2483_v53 = vadd.f32 %v2482_v61, %v2481_v33 }
 0x4b9   :  { %v4332_v25 = vpop.f32.mrb[2].mxu1 }
 0x4ba   :  { %v4334_v34 = vpop.f32.mrb[3].mxu1  ;;  %v2466_v52 = vmul.f32 %v4332_v25, %v4332_v25  ;;  %v2432_v22 = vsel %vm886_vm2, %v4332_v25, 0.0 }
 0x4bb   :  { %v2430_v19 = vsel %vm886_vm2, %v4334_v34, 0.0  ;;  %v2465_v20 = vmul.f32 %v4334_v34, %v4334_v34 }
 0x4bc   :  { %v2431_v4 = vadd.f32 %v2430_v19, %v2429_v16  ;;  %v2486_v45 = vsel %vm886_vm2, %v2466_v52, 0.0 }
 0x4bd   :  { %v2484_v63 = vsel %vm886_vm2, %v2465_v20, 0.0 }
 0x4be   :  { %v2485_v35 = vadd.f32 %v2484_v63, %v2483_v53  ;;  %v2433_v3 = vadd.f32 %v2432_v22, %v2431_v4 }
 0x4c0   :  { %v2487_v62 = vadd.f32 %v2486_v45, %v2485_v35 }
 0x4ce   :  { %v4346_v27 = vpop.f32.mrb[4].mxu1 }
 0x4cf   :  { %v4348_v42 = vpop.f32.mrb[5].mxu1  ;;  %v2468_v51 = vmul.f32 %v4346_v27, %v4346_v27  ;;  %v2436_v24 = vsel %vm886_vm2, %v4346_v27, 0.0 }
 0x4d0   :  { %v2434_v40 = vsel %vm886_vm2, %v4348_v42, 0.0  ;;  %v2467_v38 = vmul.f32 %v4348_v42, %v4348_v42 }
 0x4d1   :  { %v2435_v28 = vadd.f32 %v2434_v40, %v2433_v3  ;;  %v2490_v29 = vsel %vm886_vm2, %v2468_v51, 0.0 }
 0x4d2   :  { %v2488_v44 = vsel %vm886_vm2, %v2467_v38, 0.0 }
 0x4d3   :  { %v2489_v37 = vadd.f32 %v2488_v44, %v2487_v62  ;;  %v2437_v32 = vadd.f32 %v2436_v24, %v2435_v28 }
 0x4d5   :  { %v2491_v18 = vadd.f32 %v2490_v29, %v2489_v37 }
 0x4f1   :  { %v4360_v39 = vpop.f32.mrb[6].mxu1 }
 0x4f2   :  { %v4362_v14 = vpop.f32.mrb[7].mxu1  ;;  %v2470_v46 = vmul.f32 %v4360_v39, %v4360_v39  ;;  %v2440_v31 = vsel %vm886_vm2, %v4360_v39, 0.0 }
 0x4f3   :  { %v2438_v48 = vsel %vm886_vm2, %v4362_v14, 0.0  ;;  %v2469_v54 = vmul.f32 %v4362_v14, %v4362_v14 }
 0x4f4   :  { %v2439_v15 = vadd.f32 %v2438_v48, %v2437_v32  ;;  %v2494_v17 = vsel %vm886_vm2, %v2470_v46, 0.0 }
 0x4f5   :  { %v2492_v59 = vsel %vm886_vm2, %v2469_v54, 0.0 }
 0x4f6   :  { %v2493_v26 = vadd.f32 %v2492_v59, %v2491_v18  ;;  %v2441_v30 = vadd.f32 %v2440_v31, %v2439_v15 }
 0x4f8   :  { %v2495_v8 = vadd.f32 %v2494_v17, %v2493_v26 }
 0x511   :  { %v4374_v57 = vpop.f32.mrb[8].mxu1 }
 0x512   :  { %v4376_v7 = vpop.f32.mrb[9].mxu1  ;;  %v2472_v36 = vmul.f32 %v4374_v57, %v4374_v57  ;;  %v2444_v49 = vsel %vm886_vm2, %v4374_v57, 0.0 }
 0x513   :  { %v2442_v47 = vsel %vm886_vm2, %v4376_v7, 0.0  ;;  %v2471_v43 = vmul.f32 %v4376_v7, %v4376_v7 }
 0x514   :  { %v2443_v23 = vadd.f32 %v2442_v47, %v2441_v30  ;;  %v2498_v41 = vsel %vm886_vm2, %v2472_v36, 0.0  ;;  %v2421_v47 = vld [vmem:[%s4497_s5] sm:$0x1] }
 0x515   :  { %v2496_v50 = vsel %vm886_vm2, %v2471_v43, 0.0 }
 0x516   :  { %v2497_v60 = vadd.f32 %v2496_v50, %v2495_v8  ;;  %v2445_v5 = vadd.f32 %v2444_v49, %v2443_v23  ;;  %v2422_v49 = vld [vmem:[%s4498_s6] sm:$0x1] }
 0x518   :  { %v2499_v1 = vadd.f32 %v2498_v41, %v2497_v60 }
 0x52a   :  { %v4388_v10 = vpop.f32.mrb[10].mxu1 }
 0x52b   :  { %v4390_v56 = vpop.f32.mrb[11].mxu1  ;;  %v2474_v6 = vmul.f32 %v4388_v10, %v4388_v10  ;;  %v2448_v21 = vsel %vm886_vm2, %v4388_v10, 0.0 }
 0x52c   :  { %v2446_v12 = vsel %vm886_vm2, %v4390_v56, 0.0  ;;  %v2473_v13 = vmul.f32 %v4390_v56, %v4390_v56 }
 0x52d   :  { %v2447_v2 = vadd.f32 %v2446_v12, %v2445_v5  ;;  %v2502_v53 = vsel %vm886_vm2, %v2474_v6, 0.0 }
 0x52e   :  { %v2500_v33 = vsel %vm886_vm2, %v2473_v13, 0.0 }
 0x52f   :  { %v2501_v16 = vadd.f32 %v2500_v33, %v2499_v1  ;;  %v2449_v61 = vadd.f32 %v2448_v21, %v2447_v2 }
 0x531   :  { %v2503_v52 = vadd.f32 %v2502_v53, %v2501_v16 }
 0x535   :  { %v2757_v19 = vpop.f32.mrb[12].mxu1 }
 0x536   :  { %v2412_v20 = vpop.f32.mrb[13].mxu1  ;;  %v2476_v4 = vmul.f32 %v2757_v19, %v2757_v19  ;;  %v2452_v3 = vsel %vm886_vm2, %v2757_v19, 0.0 }
 0x537   :  { %v2450_v22 = vsel %vm886_vm2, %v2412_v20, 0.0  ;;  %v2475_v63 = vmul.f32 %v2412_v20, %v2412_v20 }
 0x538   :  { %v2451_v35 = vadd.f32 %v2450_v22, %v2449_v61  ;;  %v2506_v40 = vsel %vm886_vm2, %v2476_v4, 0.0 }
 0x539   :  { %v2504_v45 = vsel %vm886_vm2, %v2475_v63, 0.0 }
 0x53a   :  { %v2453_v62 = vadd.f32 %v2452_v3, %v2451_v35  ;;  %v2505_v51 = vadd.f32 %v2504_v45, %v2503_v52 }
 0x53c   :  { %v2454_v38 = vrot.slane %v2453_v62, 4  ;;  %v2507_v28 = vadd.f32 %v2506_v40, %v2505_v51 }
 0x53e   :  { %v2455_v24 = vadd.f32 %v2454_v38, %v2453_v62  ;;  %v2508_v44 = vrot.slane %v2507_v28, 4 }
 0x540   :  { %v2456_v37 = vrot.slane %v2455_v24, 2  ;;  %v2509_v32 = vadd.f32 %v2508_v44, %v2507_v28 }
 0x542   :  { %v2457_v29 = vadd.f32 %v2456_v37, %v2455_v24  ;;  %v2510_v18 = vrot.slane %v2509_v32, 2 }
 0x544   :  { %v2458_v46 = vrot.slane %v2457_v29, 1  ;;  %v2511_v48 = vadd.f32 %v2510_v18, %v2509_v32 }
 0x546   :  { %v2459_v54 = vadd.f32 %v2458_v46, %v2457_v29  ;;  %v2512_v15 = vrot.slane %v2511_v48, 1 }
 0x548   :  { %v2460_v31 = vmul.f32 0.0078125, %v2459_v54  ;;  %v2513_v59 = vadd.f32 %v2512_v15, %v2511_v48 }
 0x54a   :  { %v2514_v26 = vmul.f32 0.0078125, %v2513_v59  ;;  %v2515_v30 = vmul.f32 %v2460_v31, %v2460_v31 }
 0x54c   :  { %v2516_v17 = vsub.f32 %v2514_v26, %v2515_v30 }
 0x54e   :  { %v2517_v8 = vmax.f32 %v2516_v17, 0.0 }
 0x550   :  { %v2518_v36 = vadd.f32 1e-05, %v2517_v8 }
 0x552   :  { %2808 = vrsqrt.f32 %v2518_v36 }
 0x55c   :  { %v2809_v43 = vpop.eup %2808 }
 0x55d   :  { %v2520_v23 = vmul.f32 %v2809_v43, %v2421_v47 }
 0x55f   :  { %v2521_v50 = vmul.f32 %v2520_v23, %v2460_v31  ;;  %v2527_v60 = vrot.slane %v2520_v23, %v3777_v55 }
 0x561   :  { %v2522_v5 = vsub.f32 %v2422_v49, %v2521_v50  ;;  %v2529_v41 = vmul.f32 %v2527_v60, %v4310_v58  ;;  %v2530_v1 = vmul.f32 %v4304_v9, %v2527_v60  ;;  %v2531_v6 = vmul.f32 %v2527_v60, %v4320_v0 }
 0x562   :  { %v2532_v12 = vmul.f32 %v4318_v11, %v2527_v60  ;;  %v2533_v13 = vmul.f32 %v2527_v60, %v4334_v34  ;;  %v2534_v2 = vmul.f32 %v4332_v25, %v2527_v60  ;;  %v2535_v21 = vmul.f32 %v2527_v60, %v4348_v42 }
 0x563   :  { %v2536_v33 = vmul.f32 %v4346_v27, %v2527_v60  ;;  %v2537_v16 = vmul.f32 %v2527_v60, %v4362_v14  ;;  %v2538_v61 = vmul.f32 %v4360_v39, %v2527_v60  ;;  %v2539_v58 = vmul.f32 %v2527_v60, %v4376_v7 }
 0x564   :  { %v2540_v9 = vmul.f32 %v4374_v57, %v2527_v60  ;;  %v2541_v0 = vmul.f32 %v2527_v60, %v4390_v56  ;;  %v2542_v11 = vmul.f32 %v4388_v10, %v2527_v60  ;;  %v2543_v53 = vmul.f32 %v2527_v60, %v2412_v20 }
 0x565   :  { %v2544_v34 = vmul.f32 %v2757_v19, %v2527_v60  ;;  %v2549_v25 = vrot.slane %v2522_v5, %v3777_v55 }
 0x567   :  { %v2551_v52 = vadd.f32 %v2549_v25, %v2529_v41  ;;  %v2552_v42 = vadd.f32 %v2549_v25, %v2530_v1  ;;  %v2553_v4 = vadd.f32 %v2549_v25, %v2531_v6  ;;  %v2554_v27 = vadd.f32 %v2549_v25, %v2532_v12 }
 0x568   :  { %v2555_v22 = vadd.f32 %v2549_v25, %v2533_v13  ;;  %v2556_v14 = vadd.f32 %v2549_v25, %v2534_v2  ;;  %v2557_v63 = vadd.f32 %v2549_v25, %v2535_v21  ;;  %v2558_v39 = vadd.f32 %v2549_v25, %v2536_v33 }
 0x569   :  { %v2559_v35 = vadd.f32 %v2549_v25, %v2537_v16  ;;  %v2560_v7 = vadd.f32 %v2549_v25, %v2538_v61  ;;  %v2561_v3 = vadd.f32 %v2549_v25, %v2539_v58  ;;  %v2562_v57 = vadd.f32 %v2549_v25, %v2540_v9 }
 0x56a   :  { %v2563_v45 = vadd.f32 %v2549_v25, %v2541_v0  ;;  %v2564_v56 = vadd.f32 %v2549_v25, %v2542_v11  ;;  %v2565_v62 = vadd.f32 %v2549_v25, %v2543_v53  ;;  %v2566_v10 = vadd.f32 %v2549_v25, %v2544_v34 }
 0x56b   :  { %v2567_v20 = vmax.f32 %v2551_v52, 0.0  ;;  %v2568_v19 = vmax.f32 %v2552_v42, 0.0  ;;  %v2569_v51 = vmax.f32 %v2553_v4, 0.0  ;;  %v2570_v55 = vmax.f32 %v2554_v27, 0.0 }
 0x56c   :  { %v2571_v40 = vmax.f32 %v2555_v22, 0.0  ;;  %v2572_v38 = vmax.f32 %v2556_v14, 0.0  ;;  %v2573_v28 = vmax.f32 %v2557_v63, 0.0  ;;  %v2574_v24 = vmax.f32 %v2558_v39, 0.0 }
 0x56d   :  { %v2575_v44 = vmax.f32 %v2559_v35, 0.0  ;;  %v2576_v37 = vmax.f32 %v2560_v7, 0.0  ;;  %v2577_v32 = vmax.f32 %v2561_v3, 0.0  ;;  %v2578_v29 = vmax.f32 %v2562_v57, 0.0  ;;  %2583 = vst.msk [vmem:[%s4499_s7] sm:$0xff] %vm886_vm2, %v2567_v20  ;;  %2584 = vst.msk [vmem:[%s4499_s7 + $0x8] sm:$0xff] %vm886_vm2, %v2568_v19 }
 0x56e   :  { %2585 = vst.msk [vmem:[%s4499_s7 + $0x10] sm:$0xff] %vm886_vm2, %v2569_v51  ;;  %2586 = vst.msk [vmem:[%s4499_s7 + $0x18] sm:$0xff] %vm886_vm2, %v2570_v55  ;;  %v2579_v18 = vmax.f32 %v2563_v45, 0.0  ;;  %v2580_v46 = vmax.f32 %v2564_v56, 0.0  ;;  %v2581_v48 = vmax.f32 %v2565_v62, 0.0  ;;  %v2582_v54 = vmax.f32 %v2566_v10, 0.0 }
 0x56f   :  { %2587 = vst.msk [vmem:[%s4499_s7 + $0x20] sm:$0xff] %vm886_vm2, %v2571_v40  ;;  %2588 = vst.msk [vmem:[%s4499_s7 + $0x28] sm:$0xff] %vm886_vm2, %v2572_v38 }
 0x570   :  { %2589 = vst.msk [vmem:[%s4499_s7 + $0x30] sm:$0xff] %vm886_vm2, %v2573_v28  ;;  %2590 = vst.msk [vmem:[%s4499_s7 + $0x38] sm:$0xff] %vm886_vm2, %v2574_v24 }
 0x571   :  { %2591 = vst.msk [vmem:[%s4499_s7 + $0x40] sm:$0xff] %vm886_vm2, %v2575_v44  ;;  %2592 = vst.msk [vmem:[%s4499_s7 + $0x48] sm:$0xff] %vm886_vm2, %v2576_v37 }
 0x572   :  { %2593 = vst.msk [vmem:[%s4499_s7 + $0x50] sm:$0xff] %vm886_vm2, %v2577_v32  ;;  %2594 = vst.msk [vmem:[%s4499_s7 + $0x58] sm:$0xff] %vm886_vm2, %v2578_v29 }
 0x573   :  { %2595 = vst.msk [vmem:[%s4499_s7 + $0x60] sm:$0xff] %vm886_vm2, %v2579_v18  ;;  %2596 = vst.msk [vmem:[%s4499_s7 + $0x68] sm:$0xff] %vm886_vm2, %v2580_v46 }
 0x574   :  { %2597 = vst.msk [vmem:[%s4499_s7 + $0x70] sm:$0xff] %vm886_vm2, %v2581_v48  ;;  %2598 = vst.msk [vmem:[%s4499_s7 + $0x78] sm:$0xff] %vm886_vm2, %v2582_v54 }

</bundles_post_ra>
